<compile_context>
chip_gen: v5e
topology: v5e:2x2
jax: 0.10.0
libtpu: 0.0.40
codegen_flags: <defaults>
</compile_context>

<pallas_src>
import functools

import jax
import jax.numpy as jnp
from jax.experimental import pallas as pl
from jax.experimental.pallas import tpu as pltpu

BATCH_TILE = 8  # f32 sublane count; one vreg worth of rows per grid step.


# ------------------------------ fused kernel --------------------------------

def _fused_forward_kernel(x_ref, li_ref, w0f_ref, b0f_ref, whh0_ref,
                          w1l_ref, b1l_ref, w2t_ref, b2_ref, o_ref,
                          *, T, BT, H):
    """Whole forward pass for one batch tile.

    x_ref:   (T, BT, F)  time-major input tile
    li_ref:  (BT, 1)     int32 last index per row
    w0f_ref: (F, 4H)     linear1 composed with layer-0 input projection
    b0f_ref: (1, 4H)
    whh0_ref:(H, 4H)     layer-0 recurrent weights
    w1l_ref: (2H, 4H)    stacked [wih1^T ; whh1^T]
    b1l_ref: (1, 4H)
    w2t_ref: (H, C), b2_ref: (1, C)
    o_ref:   (BT, C)     logits
    Gate order in all 4H blocks is (i, f, o, g).
    """
    Fdim = x_ref.shape[-1]

    # ---- Prologue: one big MXU matmul over all T*BT rows (off the recurrence).
    x_all = x_ref[...].reshape(T * BT, Fdim)
    z0_all = (jnp.dot(x_all, w0f_ref[...], preferred_element_type=jnp.float32)
              + b0f_ref[...])                                    # (T*BT, 4H)

    # Weights / constants loaded once and kept live across the unrolled loop.
    whh0 = whh0_ref[...]
    w1l = w1l_ref[...]
    # Hoisted loop-invariant broadcast (JAX does not CSE broadcast_in_dim).
    b1l = jnp.broadcast_to(b1l_ref[...], (BT, 4 * H))
    last_idx = li_ref[...]                                       # (BT, 1) int32

    def cell(z, c_prev):
        # Gate order (i, f, o, g): sigmoid on 3H lanes, tanh on the last H.
        s = jax.nn.sigmoid(z[:, :3 * H])
        g_g = jnp.tanh(z[:, 3 * H:])
        i_g = s[:, :H]
        f_g = s[:, H:2 * H]
        o_g = s[:, 2 * H:3 * H]
        c_new = f_g * c_prev + i_g * g_g
        h_new = o_g * jnp.tanh(c_new)
        return h_new, c_new

    zeros = jnp.zeros((BT, H), jnp.float32)
    h0, c0, h1, c1, y = zeros, zeros, zeros, zeros, zeros

    # T is small and static: fully unrolled loop, h/c state stays in vregs.
    # Two serial MXU pushes per timestep (layer-0 recurrent, fused layer-1).
    for t in range(T):
        z0 = z0_all[t * BT:(t + 1) * BT, :] + jnp.dot(
            h0, whh0, preferred_element_type=jnp.float32)        # (BT, 4H)
        h0, c0 = cell(z0, c0)
        z1 = jnp.dot(jnp.concatenate([h0, h1], axis=1), w1l,
                     preferred_element_type=jnp.float32) + b1l   # (BT, 4H)
        h1, c1 = cell(z1, c1)
        # torch.gather(output, 1, last_idxes) done on the fly (no (T,B,H) slab).
        y = jnp.where(last_idx == t, h1, y)

    logits = (jnp.dot(jnp.maximum(y, 0.0), w2t_ref[...],
                      preferred_element_type=jnp.float32) + b2_ref[...])
    o_ref[...] = logits.astype(o_ref.dtype)


# ------------------------------ host-side packing ----------------------------

def _reorder_gates(m):
    """PyTorch gate order (i, f, g, o) -> (i, f, o, g) along the last axis."""
    i, f, g, o = jnp.split(m, 4, axis=-1)
    return jnp.concatenate([i, f, o, g], axis=-1)


def pack_params(w1, b1, lstm_params, w2, b2):
    (wih0, whh0, bih0, bhh0), (wih1, whh1, bih1, bhh1) = lstm_params
    w1t = jnp.transpose(w1)                                      # (F, E)
    wih0t = jnp.transpose(wih0)                                  # (E, 4H)
    # linear1 composed with the layer-0 input projection (pure algebra, once).
    w0f = _reorder_gates(w1t @ wih0t)                            # (F, 4H)
    b0f = _reorder_gates(b1[None, :] @ wih0t
                         + (bih0 + bhh0)[None, :])               # (1, 4H)
    whh0t = _reorder_gates(jnp.transpose(whh0))                  # (H, 4H)
    # Layer-1 input + recurrent weights stacked: z1 = [h0|h1] @ w1l + b1l.
    w1l = _reorder_gates(jnp.concatenate(
        [jnp.transpose(wih1), jnp.transpose(whh1)], axis=0))     # (2H, 4H)
    b1l = _reorder_gates((bih1 + bhh1)[None, :])                 # (1, 4H)
    w2t = jnp.transpose(w2)                                      # (H, C)
    b2r = b2[None, :]                                            # (1, C)
    return tuple(jnp.asarray(a, jnp.float32)
                 for a in (w0f, b0f, whh0t, w1l, b1l, w2t, b2r))


# ------------------------------ wrapper --------------------------------------

def lstm_forward_pallas(x, last_idxes, packed):
    """One fused pallas_call for the entire forward pass."""
    w0f, b0f, whh0t, w1l, b1l, w2t, b2r = packed
    B, T, Fdim = x.shape
    H = whh0t.shape[0]
    C = w2t.shape[1]

    # Pad batch to a sublane-aligned tile of 8 rows; padded rows are discarded.
    BT = BATCH_TILE
    Bp = ((B + BT - 1) // BT) * BT
    pad = Bp - B
    x_tbf = jnp.transpose(x, (1, 0, 2))                          # (T, B, F)
    li = last_idxes.astype(jnp.int32).reshape(B, 1)
    if pad:
        x_tbf = jnp.pad(x_tbf, ((0, 0), (0, pad), (0, 0)))
        li = jnp.pad(li, ((0, pad), (0, 0)))

    n_tiles = Bp // BT
    kernel = functools.partial(_fused_forward_kernel, T=T, BT=BT, H=H)

    def full_spec(a):
        nd = a.ndim
        return pl.BlockSpec(a.shape, lambda j, _nd=nd: (0,) * _nd)

    out = pl.pallas_call(
        kernel,
        out_shape=jax.ShapeDtypeStruct((Bp, C), jnp.float32),
        grid=(n_tiles,),
        in_specs=[
            pl.BlockSpec((T, BT, Fdim), lambda j: (0, j, 0)),
            pl.BlockSpec((BT, 1), lambda j: (j, 0)),
            full_spec(w0f), full_spec(b0f), full_spec(whh0t),
            full_spec(w1l), full_spec(b1l), full_spec(w2t), full_spec(b2r),
        ],
        out_specs=pl.BlockSpec((BT, C), lambda j: (j, 0)),
        compiler_params=pltpu.CompilerParams(
            dimension_semantics=("parallel",)),   # batch tiles -> 2nd TC on v7x
    )(x_tbf, li, w0f, b0f, whh0t, w1l, b1l, w2t, b2r)
    return out[:B]


_forward_jit = jax.jit(lstm_forward_pallas)


# ------------------------------ model wrapper --------------------------------

class LSTMPallas:
    """Mirror of the PyTorch LSTM module's forward (eval mode, unidirectional)."""

    def __init__(self, feat_size, embed_size, hidden_size, num_classes, key):
        ks = jax.random.split(key, 16)

        def u(k, shape, fan_in):
            s = 1.0 / jnp.sqrt(jnp.float32(fan_in))
            return jax.random.uniform(k, shape, jnp.float32, -s, s)

        H = hidden_size
        self.hidden_size = H
        # linear1: feat -> embed
        self.w1 = u(ks[0], (embed_size, feat_size), feat_size)
        self.b1 = u(ks[1], (embed_size,), feat_size)
        # LSTM layer 0 (input embed_size) and layer 1 (input hidden_size),
        # PyTorch layout/order: (4H, in) with gates (i, f, g, o).
        self.lstm_params = [
            (u(ks[2], (4 * H, embed_size), H), u(ks[3], (4 * H, H), H),
             u(ks[4], (4 * H,), H), u(ks[5], (4 * H,), H)),
            (u(ks[6], (4 * H, H), H), u(ks[7], (4 * H, H), H),
             u(ks[8], (4 * H,), H), u(ks[9], (4 * H,), H)),
        ]
        # final linear: hidden -> num_classes
        self.w2 = u(ks[10], (num_classes, H), H)
        self.b2 = u(ks[11], (num_classes,), H)
        # Fused / gate-reordered parameters for the kernel (computed once).
        self.packed = pack_params(self.w1, self.b1, self.lstm_params,
                                  self.w2, self.b2)

    def __call__(self, x, last_idxes=None):
        B, T, _ = x.shape
        if last_idxes is None:
            # PyTorch path asserts B == 1 and takes output[:, -1, :].
            last_idxes = jnp.full((B,), T - 1, jnp.int32)
        return _forward_jit(x, last_idxes, self.packed)


# ---------------------------- pure-JAX reference -----------------------------

def reference_forward(model, x, last_idxes):
    B, T, _ = x.shape
    h = jnp.einsum('btf,ef->bte', x, model.w1) + model.b1
    inp = h
    for (w_ih, w_hh, b_ih, b_hh) in model.lstm_params:
        H = w_hh.shape[1]
        hs = jnp.zeros((B, H), jnp.float32)
        cs = jnp.zeros((B, H), jnp.float32)
        outs = []
        for t in range(T):
            z = inp[:, t, :] @ w_ih.T + hs @ w_hh.T + b_ih + b_hh
            i = jax.nn.sigmoid(z[:, :H]); f = jax.nn.sigmoid(z[:, H:2 * H])
            g = jnp.tanh(z[:, 2 * H:3 * H]); o = jax.nn.sigmoid(z[:, 3 * H:])
            cs = f * cs + i * g
            hs = o * jnp.tanh(cs)
            outs.append(hs)
        inp = jnp.stack(outs, axis=1)
    y = inp[jnp.arange(B), last_idxes, :]
    return jnp.maximum(y, 0.0) @ model.w2.T + model.b2


# ---------------------------------- main --------------------------------------

if __name__ == "__main__":
    key = jax.random.PRNGKey(0)
    k_param, k_x = jax.random.split(key)

    feat_size, embed_size, hidden_size, num_classes = 16, 32, 32, 4
    B, T = 2, 8

    model = LSTMPallas(feat_size, embed_size, hidden_size, num_classes, k_param)

    x = jax.random.normal(k_x, (B, T, feat_size), jnp.float32)
    last_idxes = jnp.array([T - 1, T - 3], dtype=jnp.int32)

    z = model(x, last_idxes)
    z = jax.block_until_ready(z)

    z_ref = reference_forward(model, x, last_idxes)
    assert z.shape == (B, num_classes)
    assert jnp.allclose(z, z_ref, rtol=1e-4, atol=1e-4), (z, z_ref)

    print("KERNEL_OK")
</pallas_src>

<mosaic_0001>
module attributes {stable_mosaic.version = 11 : i64} {
  func.func @_fused_forward_kernel(%arg0: i32, %arg1: memref<8x8x16xf32, #tpu.memory_space<vmem>>, %arg2: memref<8x1xi32, #tpu.memory_space<vmem>>, %arg3: memref<16x128xf32, #tpu.memory_space<vmem>>, %arg4: memref<1x128xf32, #tpu.memory_space<vmem>>, %arg5: memref<32x128xf32, #tpu.memory_space<vmem>>, %arg6: memref<64x128xf32, #tpu.memory_space<vmem>>, %arg7: memref<1x128xf32, #tpu.memory_space<vmem>>, %arg8: memref<32x4xf32, #tpu.memory_space<vmem>>, %arg9: memref<1x4xf32, #tpu.memory_space<vmem>>, %arg10: memref<8x4xf32, #tpu.memory_space<vmem>>) attributes {dimension_semantics = [#tpu.dimension_semantics<parallel>], iteration_bounds = array<i64: 1>, scalar_prefetch = 0 : i64, scratch_operands = 0 : i64, tpu.core_type = #tpu.core_type<tc>, window_params = [{transform_indices = @transform_0, window_bounds = array<i64: 8, 8, 16>}, {transform_indices = @transform_1, window_bounds = array<i64: 8, 1>}, {pipeline_mode = #tpu.pipeline_mode<synchronous>, transform_indices = @transform_2, window_bounds = array<i64: 16, 128>}, {pipeline_mode = #tpu.pipeline_mode<synchronous>, transform_indices = @transform_3, window_bounds = array<i64: 1, 128>}, {pipeline_mode = #tpu.pipeline_mode<synchronous>, transform_indices = @transform_4, window_bounds = array<i64: 32, 128>}, {pipeline_mode = #tpu.pipeline_mode<synchronous>, transform_indices = @transform_5, window_bounds = array<i64: 64, 128>}, {pipeline_mode = #tpu.pipeline_mode<synchronous>, transform_indices = @transform_6, window_bounds = array<i64: 1, 128>}, {pipeline_mode = #tpu.pipeline_mode<synchronous>, transform_indices = @transform_7, window_bounds = array<i64: 32, 4>}, {pipeline_mode = #tpu.pipeline_mode<synchronous>, transform_indices = @transform_8, window_bounds = array<i64: 1, 4>}, {transform_indices = @transform_9, window_bounds = array<i64: 8, 4>}]} {
    %c0 = arith.constant 0 : index
    %c0_0 = arith.constant 0 : index
    %c0_1 = arith.constant 0 : index
    %0 = vector.load %arg1[%c0, %c0_0, %c0_1] : memref<8x8x16xf32, #tpu.memory_space<vmem>>, vector<8x8x16xf32>
    %1 = vector.shape_cast %0 : vector<8x8x16xf32> to vector<64x16xf32>
    %c0_2 = arith.constant 0 : index
    %c0_3 = arith.constant 0 : index
    %2 = vector.load %arg3[%c0_2, %c0_3] : memref<16x128xf32, #tpu.memory_space<vmem>>, vector<16x128xf32>
    %cst = arith.constant dense<0.000000e+00> : vector<64x128xf32>
    %3 = tpu.matmul %1, %2, %cst {dimension_numbers = #tpu.dot_dimension_numbers<[1], [0], [0], [1], [0, 0, 1, 1], [], []>} : vector<64x16xf32>, vector<16x128xf32>, vector<64x128xf32> -> vector<64x128xf32>
    %c0_4 = arith.constant 0 : index
    %c0_5 = arith.constant 0 : index
    %4 = vector.load %arg4[%c0_4, %c0_5] : memref<1x128xf32, #tpu.memory_space<vmem>>, vector<1x128xf32>
    %5 = vector.broadcast %4 : vector<1x128xf32> to vector<64x128xf32>
    %6 = arith.addf %3, %5 : vector<64x128xf32>
    %c0_6 = arith.constant 0 : index
    %c0_7 = arith.constant 0 : index
    %7 = vector.load %arg5[%c0_6, %c0_7] : memref<32x128xf32, #tpu.memory_space<vmem>>, vector<32x128xf32>
    %c0_8 = arith.constant 0 : index
    %c0_9 = arith.constant 0 : index
    %8 = vector.load %arg6[%c0_8, %c0_9] : memref<64x128xf32, #tpu.memory_space<vmem>>, vector<64x128xf32>
    %c0_10 = arith.constant 0 : index
    %c0_11 = arith.constant 0 : index
    %9 = vector.load %arg7[%c0_10, %c0_11] : memref<1x128xf32, #tpu.memory_space<vmem>>, vector<1x128xf32>
    %10 = vector.shape_cast %9 : vector<1x128xf32> to vector<1x128xf32>
    %11 = vector.broadcast %10 : vector<1x128xf32> to vector<8x128xf32>
    %c0_12 = arith.constant 0 : index
    %c0_13 = arith.constant 0 : index
    %12 = vector.load %arg2[%c0_12, %c0_13] : memref<8x1xi32, #tpu.memory_space<vmem>>, vector<8x1xi32>
    %cst_14 = arith.constant 0.000000e+00 : f32
    %13 = vector.broadcast %cst_14 : f32 to vector<8x32xf32>
    %14 = vector.extract_strided_slice %6 {offsets = [0, 0], sizes = [8, 128], strides = [1, 1]} : vector<64x128xf32> to vector<8x128xf32>
    %cst_15 = arith.constant dense<0.000000e+00> : vector<8x128xf32>
    %15 = tpu.matmul %13, %7, %cst_15 {dimension_numbers = #tpu.dot_dimension_numbers<[1], [0], [0], [1], [0, 0, 1, 1], [], []>} : vector<8x32xf32>, vector<32x128xf32>, vector<8x128xf32> -> vector<8x128xf32>
    %16 = arith.addf %14, %15 : vector<8x128xf32>
    %17 = vector.extract_strided_slice %16 {offsets = [0, 0], sizes = [8, 96], strides = [1, 1]} : vector<8x128xf32> to vector<8x96xf32>
    %18 = arith.negf %17 : vector<8x96xf32>
    %19 = math.exp %18 : vector<8x96xf32>
    %cst_16 = arith.constant 1.000000e+00 : f32
    %20 = vector.broadcast %cst_16 : f32 to vector<8x96xf32>
    %21 = arith.addf %20, %19 : vector<8x96xf32>
    %22 = arith.divf %20, %21 : vector<8x96xf32>
    %23 = vector.extract_strided_slice %16 {offsets = [0, 96], sizes = [8, 32], strides = [1, 1]} : vector<8x128xf32> to vector<8x32xf32>
    %24 = math.tanh %23 : vector<8x32xf32>
    %25 = vector.extract_strided_slice %22 {offsets = [0, 0], sizes = [8, 32], strides = [1, 1]} : vector<8x96xf32> to vector<8x32xf32>
    %26 = vector.extract_strided_slice %22 {offsets = [0, 32], sizes = [8, 32], strides = [1, 1]} : vector<8x96xf32> to vector<8x32xf32>
    %27 = vector.extract_strided_slice %22 {offsets = [0, 64], sizes = [8, 32], strides = [1, 1]} : vector<8x96xf32> to vector<8x32xf32>
    %28 = arith.mulf %26, %13 : vector<8x32xf32>
    %29 = arith.mulf %25, %24 : vector<8x32xf32>
    %30 = arith.addf %28, %29 : vector<8x32xf32>
    %31 = math.tanh %30 : vector<8x32xf32>
    %32 = arith.mulf %27, %31 : vector<8x32xf32>
    %33 = tpu.concatenate %32, %13 in 1 : vector<8x32xf32>, vector<8x32xf32> -> vector<8x64xf32>
    %cst_17 = arith.constant dense<0.000000e+00> : vector<8x128xf32>
    %34 = tpu.matmul %33, %8, %cst_17 {dimension_numbers = #tpu.dot_dimension_numbers<[1], [0], [0], [1], [0, 0, 1, 1], [], []>} : vector<8x64xf32>, vector<64x128xf32>, vector<8x128xf32> -> vector<8x128xf32>
    %35 = arith.addf %34, %11 : vector<8x128xf32>
    %36 = vector.extract_strided_slice %35 {offsets = [0, 0], sizes = [8, 96], strides = [1, 1]} : vector<8x128xf32> to vector<8x96xf32>
    %37 = arith.negf %36 : vector<8x96xf32>
    %38 = math.exp %37 : vector<8x96xf32>
    %cst_18 = arith.constant 1.000000e+00 : f32
    %39 = vector.broadcast %cst_18 : f32 to vector<8x96xf32>
    %40 = arith.addf %39, %38 : vector<8x96xf32>
    %41 = arith.divf %39, %40 : vector<8x96xf32>
    %42 = vector.extract_strided_slice %35 {offsets = [0, 96], sizes = [8, 32], strides = [1, 1]} : vector<8x128xf32> to vector<8x32xf32>
    %43 = math.tanh %42 : vector<8x32xf32>
    %44 = vector.extract_strided_slice %41 {offsets = [0, 0], sizes = [8, 32], strides = [1, 1]} : vector<8x96xf32> to vector<8x32xf32>
    %45 = vector.extract_strided_slice %41 {offsets = [0, 32], sizes = [8, 32], strides = [1, 1]} : vector<8x96xf32> to vector<8x32xf32>
    %46 = vector.extract_strided_slice %41 {offsets = [0, 64], sizes = [8, 32], strides = [1, 1]} : vector<8x96xf32> to vector<8x32xf32>
    %47 = arith.mulf %45, %13 : vector<8x32xf32>
    %48 = arith.mulf %44, %43 : vector<8x32xf32>
    %49 = arith.addf %47, %48 : vector<8x32xf32>
    %50 = math.tanh %49 : vector<8x32xf32>
    %51 = arith.mulf %46, %50 : vector<8x32xf32>
    %c0_i32 = arith.constant 0 : i32
    %52 = vector.broadcast %c0_i32 : i32 to vector<8x1xi32>
    %53 = arith.cmpi eq, %12, %52 : vector<8x1xi32>
    %54 = vector.shape_cast %53 : vector<8x1xi1> to vector<8x1xi1>
    %55 = vector.broadcast %54 : vector<8x1xi1> to vector<8x32xi1>
    %56 = arith.select %55, %51, %13 : vector<8x32xi1>, vector<8x32xf32>
    %57 = vector.extract_strided_slice %6 {offsets = [8, 0], sizes = [8, 128], strides = [1, 1]} : vector<64x128xf32> to vector<8x128xf32>
    %cst_19 = arith.constant dense<0.000000e+00> : vector<8x128xf32>
    %58 = tpu.matmul %32, %7, %cst_19 {dimension_numbers = #tpu.dot_dimension_numbers<[1], [0], [0], [1], [0, 0, 1, 1], [], []>} : vector<8x32xf32>, vector<32x128xf32>, vector<8x128xf32> -> vector<8x128xf32>
    %59 = arith.addf %57, %58 : vector<8x128xf32>
    %60 = vector.extract_strided_slice %59 {offsets = [0, 0], sizes = [8, 96], strides = [1, 1]} : vector<8x128xf32> to vector<8x96xf32>
    %61 = arith.negf %60 : vector<8x96xf32>
    %62 = math.exp %61 : vector<8x96xf32>
    %cst_20 = arith.constant 1.000000e+00 : f32
    %63 = vector.broadcast %cst_20 : f32 to vector<8x96xf32>
    %64 = arith.addf %63, %62 : vector<8x96xf32>
    %65 = arith.divf %63, %64 : vector<8x96xf32>
    %66 = vector.extract_strided_slice %59 {offsets = [0, 96], sizes = [8, 32], strides = [1, 1]} : vector<8x128xf32> to vector<8x32xf32>
    %67 = math.tanh %66 : vector<8x32xf32>
    %68 = vector.extract_strided_slice %65 {offsets = [0, 0], sizes = [8, 32], strides = [1, 1]} : vector<8x96xf32> to vector<8x32xf32>
    %69 = vector.extract_strided_slice %65 {offsets = [0, 32], sizes = [8, 32], strides = [1, 1]} : vector<8x96xf32> to vector<8x32xf32>
    %70 = vector.extract_strided_slice %65 {offsets = [0, 64], sizes = [8, 32], strides = [1, 1]} : vector<8x96xf32> to vector<8x32xf32>
    %71 = arith.mulf %69, %30 : vector<8x32xf32>
    %72 = arith.mulf %68, %67 : vector<8x32xf32>
    %73 = arith.addf %71, %72 : vector<8x32xf32>
    %74 = math.tanh %73 : vector<8x32xf32>
    %75 = arith.mulf %70, %74 : vector<8x32xf32>
    %76 = tpu.concatenate %75, %51 in 1 : vector<8x32xf32>, vector<8x32xf32> -> vector<8x64xf32>
    %cst_21 = arith.constant dense<0.000000e+00> : vector<8x128xf32>
    %77 = tpu.matmul %76, %8, %cst_21 {dimension_numbers = #tpu.dot_dimension_numbers<[1], [0], [0], [1], [0, 0, 1, 1], [], []>} : vector<8x64xf32>, vector<64x128xf32>, vector<8x128xf32> -> vector<8x128xf32>
    %78 = arith.addf %77, %11 : vector<8x128xf32>
    %79 = vector.extract_strided_slice %78 {offsets = [0, 0], sizes = [8, 96], strides = [1, 1]} : vector<8x128xf32> to vector<8x96xf32>
    %80 = arith.negf %79 : vector<8x96xf32>
    %81 = math.exp %80 : vector<8x96xf32>
    %cst_22 = arith.constant 1.000000e+00 : f32
    %82 = vector.broadcast %cst_22 : f32 to vector<8x96xf32>
    %83 = arith.addf %82, %81 : vector<8x96xf32>
    %84 = arith.divf %82, %83 : vector<8x96xf32>
    %85 = vector.extract_strided_slice %78 {offsets = [0, 96], sizes = [8, 32], strides = [1, 1]} : vector<8x128xf32> to vector<8x32xf32>
    %86 = math.tanh %85 : vector<8x32xf32>
    %87 = vector.extract_strided_slice %84 {offsets = [0, 0], sizes = [8, 32], strides = [1, 1]} : vector<8x96xf32> to vector<8x32xf32>
    %88 = vector.extract_strided_slice %84 {offsets = [0, 32], sizes = [8, 32], strides = [1, 1]} : vector<8x96xf32> to vector<8x32xf32>
    %89 = vector.extract_strided_slice %84 {offsets = [0, 64], sizes = [8, 32], strides = [1, 1]} : vector<8x96xf32> to vector<8x32xf32>
    %90 = arith.mulf %88, %49 : vector<8x32xf32>
    %91 = arith.mulf %87, %86 : vector<8x32xf32>
    %92 = arith.addf %90, %91 : vector<8x32xf32>
    %93 = math.tanh %92 : vector<8x32xf32>
    %94 = arith.mulf %89, %93 : vector<8x32xf32>
    %c1_i32 = arith.constant 1 : i32
    %95 = vector.broadcast %c1_i32 : i32 to vector<8x1xi32>
    %96 = arith.cmpi eq, %12, %95 : vector<8x1xi32>
    %97 = vector.shape_cast %96 : vector<8x1xi1> to vector<8x1xi1>
    %98 = vector.broadcast %97 : vector<8x1xi1> to vector<8x32xi1>
    %99 = arith.select %98, %94, %56 : vector<8x32xi1>, vector<8x32xf32>
    %100 = vector.extract_strided_slice %6 {offsets = [16, 0], sizes = [8, 128], strides = [1, 1]} : vector<64x128xf32> to vector<8x128xf32>
    %cst_23 = arith.constant dense<0.000000e+00> : vector<8x128xf32>
    %101 = tpu.matmul %75, %7, %cst_23 {dimension_numbers = #tpu.dot_dimension_numbers<[1], [0], [0], [1], [0, 0, 1, 1], [], []>} : vector<8x32xf32>, vector<32x128xf32>, vector<8x128xf32> -> vector<8x128xf32>
    %102 = arith.addf %100, %101 : vector<8x128xf32>
    %103 = vector.extract_strided_slice %102 {offsets = [0, 0], sizes = [8, 96], strides = [1, 1]} : vector<8x128xf32> to vector<8x96xf32>
    %104 = arith.negf %103 : vector<8x96xf32>
    %105 = math.exp %104 : vector<8x96xf32>
    %cst_24 = arith.constant 1.000000e+00 : f32
    %106 = vector.broadcast %cst_24 : f32 to vector<8x96xf32>
    %107 = arith.addf %106, %105 : vector<8x96xf32>
    %108 = arith.divf %106, %107 : vector<8x96xf32>
    %109 = vector.extract_strided_slice %102 {offsets = [0, 96], sizes = [8, 32], strides = [1, 1]} : vector<8x128xf32> to vector<8x32xf32>
    %110 = math.tanh %109 : vector<8x32xf32>
    %111 = vector.extract_strided_slice %108 {offsets = [0, 0], sizes = [8, 32], strides = [1, 1]} : vector<8x96xf32> to vector<8x32xf32>
    %112 = vector.extract_strided_slice %108 {offsets = [0, 32], sizes = [8, 32], strides = [1, 1]} : vector<8x96xf32> to vector<8x32xf32>
    %113 = vector.extract_strided_slice %108 {offsets = [0, 64], sizes = [8, 32], strides = [1, 1]} : vector<8x96xf32> to vector<8x32xf32>
    %114 = arith.mulf %112, %73 : vector<8x32xf32>
    %115 = arith.mulf %111, %110 : vector<8x32xf32>
    %116 = arith.addf %114, %115 : vector<8x32xf32>
    %117 = math.tanh %116 : vector<8x32xf32>
    %118 = arith.mulf %113, %117 : vector<8x32xf32>
    %119 = tpu.concatenate %118, %94 in 1 : vector<8x32xf32>, vector<8x32xf32> -> vector<8x64xf32>
    %cst_25 = arith.constant dense<0.000000e+00> : vector<8x128xf32>
    %120 = tpu.matmul %119, %8, %cst_25 {dimension_numbers = #tpu.dot_dimension_numbers<[1], [0], [0], [1], [0, 0, 1, 1], [], []>} : vector<8x64xf32>, vector<64x128xf32>, vector<8x128xf32> -> vector<8x128xf32>
    %121 = arith.addf %120, %11 : vector<8x128xf32>
    %122 = vector.extract_strided_slice %121 {offsets = [0, 0], sizes = [8, 96], strides = [1, 1]} : vector<8x128xf32> to vector<8x96xf32>
    %123 = arith.negf %122 : vector<8x96xf32>
    %124 = math.exp %123 : vector<8x96xf32>
    %cst_26 = arith.constant 1.000000e+00 : f32
    %125 = vector.broadcast %cst_26 : f32 to vector<8x96xf32>
    %126 = arith.addf %125, %124 : vector<8x96xf32>
    %127 = arith.divf %125, %126 : vector<8x96xf32>
    %128 = vector.extract_strided_slice %121 {offsets = [0, 96], sizes = [8, 32], strides = [1, 1]} : vector<8x128xf32> to vector<8x32xf32>
    %129 = math.tanh %128 : vector<8x32xf32>
    %130 = vector.extract_strided_slice %127 {offsets = [0, 0], sizes = [8, 32], strides = [1, 1]} : vector<8x96xf32> to vector<8x32xf32>
    %131 = vector.extract_strided_slice %127 {offsets = [0, 32], sizes = [8, 32], strides = [1, 1]} : vector<8x96xf32> to vector<8x32xf32>
    %132 = vector.extract_strided_slice %127 {offsets = [0, 64], sizes = [8, 32], strides = [1, 1]} : vector<8x96xf32> to vector<8x32xf32>
    %133 = arith.mulf %131, %92 : vector<8x32xf32>
    %134 = arith.mulf %130, %129 : vector<8x32xf32>
    %135 = arith.addf %133, %134 : vector<8x32xf32>
    %136 = math.tanh %135 : vector<8x32xf32>
    %137 = arith.mulf %132, %136 : vector<8x32xf32>
    %c2_i32 = arith.constant 2 : i32
    %138 = vector.broadcast %c2_i32 : i32 to vector<8x1xi32>
    %139 = arith.cmpi eq, %12, %138 : vector<8x1xi32>
    %140 = vector.shape_cast %139 : vector<8x1xi1> to vector<8x1xi1>
    %141 = vector.broadcast %140 : vector<8x1xi1> to vector<8x32xi1>
    %142 = arith.select %141, %137, %99 : vector<8x32xi1>, vector<8x32xf32>
    %143 = vector.extract_strided_slice %6 {offsets = [24, 0], sizes = [8, 128], strides = [1, 1]} : vector<64x128xf32> to vector<8x128xf32>
    %cst_27 = arith.constant dense<0.000000e+00> : vector<8x128xf32>
    %144 = tpu.matmul %118, %7, %cst_27 {dimension_numbers = #tpu.dot_dimension_numbers<[1], [0], [0], [1], [0, 0, 1, 1], [], []>} : vector<8x32xf32>, vector<32x128xf32>, vector<8x128xf32> -> vector<8x128xf32>
    %145 = arith.addf %143, %144 : vector<8x128xf32>
    %146 = vector.extract_strided_slice %145 {offsets = [0, 0], sizes = [8, 96], strides = [1, 1]} : vector<8x128xf32> to vector<8x96xf32>
    %147 = arith.negf %146 : vector<8x96xf32>
    %148 = math.exp %147 : vector<8x96xf32>
    %cst_28 = arith.constant 1.000000e+00 : f32
    %149 = vector.broadcast %cst_28 : f32 to vector<8x96xf32>
    %150 = arith.addf %149, %148 : vector<8x96xf32>
    %151 = arith.divf %149, %150 : vector<8x96xf32>
    %152 = vector.extract_strided_slice %145 {offsets = [0, 96], sizes = [8, 32], strides = [1, 1]} : vector<8x128xf32> to vector<8x32xf32>
    %153 = math.tanh %152 : vector<8x32xf32>
    %154 = vector.extract_strided_slice %151 {offsets = [0, 0], sizes = [8, 32], strides = [1, 1]} : vector<8x96xf32> to vector<8x32xf32>
    %155 = vector.extract_strided_slice %151 {offsets = [0, 32], sizes = [8, 32], strides = [1, 1]} : vector<8x96xf32> to vector<8x32xf32>
    %156 = vector.extract_strided_slice %151 {offsets = [0, 64], sizes = [8, 32], strides = [1, 1]} : vector<8x96xf32> to vector<8x32xf32>
    %157 = arith.mulf %155, %116 : vector<8x32xf32>
    %158 = arith.mulf %154, %153 : vector<8x32xf32>
    %159 = arith.addf %157, %158 : vector<8x32xf32>
    %160 = math.tanh %159 : vector<8x32xf32>
    %161 = arith.mulf %156, %160 : vector<8x32xf32>
    %162 = tpu.concatenate %161, %137 in 1 : vector<8x32xf32>, vector<8x32xf32> -> vector<8x64xf32>
    %cst_29 = arith.constant dense<0.000000e+00> : vector<8x128xf32>
    %163 = tpu.matmul %162, %8, %cst_29 {dimension_numbers = #tpu.dot_dimension_numbers<[1], [0], [0], [1], [0, 0, 1, 1], [], []>} : vector<8x64xf32>, vector<64x128xf32>, vector<8x128xf32> -> vector<8x128xf32>
    %164 = arith.addf %163, %11 : vector<8x128xf32>
    %165 = vector.extract_strided_slice %164 {offsets = [0, 0], sizes = [8, 96], strides = [1, 1]} : vector<8x128xf32> to vector<8x96xf32>
    %166 = arith.negf %165 : vector<8x96xf32>
    %167 = math.exp %166 : vector<8x96xf32>
    %cst_30 = arith.constant 1.000000e+00 : f32
    %168 = vector.broadcast %cst_30 : f32 to vector<8x96xf32>
    %169 = arith.addf %168, %167 : vector<8x96xf32>
    %170 = arith.divf %168, %169 : vector<8x96xf32>
    %171 = vector.extract_strided_slice %164 {offsets = [0, 96], sizes = [8, 32], strides = [1, 1]} : vector<8x128xf32> to vector<8x32xf32>
    %172 = math.tanh %171 : vector<8x32xf32>
    %173 = vector.extract_strided_slice %170 {offsets = [0, 0], sizes = [8, 32], strides = [1, 1]} : vector<8x96xf32> to vector<8x32xf32>
    %174 = vector.extract_strided_slice %170 {offsets = [0, 32], sizes = [8, 32], strides = [1, 1]} : vector<8x96xf32> to vector<8x32xf32>
    %175 = vector.extract_strided_slice %170 {offsets = [0, 64], sizes = [8, 32], strides = [1, 1]} : vector<8x96xf32> to vector<8x32xf32>
    %176 = arith.mulf %174, %135 : vector<8x32xf32>
    %177 = arith.mulf %173, %172 : vector<8x32xf32>
    %178 = arith.addf %176, %177 : vector<8x32xf32>
    %179 = math.tanh %178 : vector<8x32xf32>
    %180 = arith.mulf %175, %179 : vector<8x32xf32>
    %c3_i32 = arith.constant 3 : i32
    %181 = vector.broadcast %c3_i32 : i32 to vector<8x1xi32>
    %182 = arith.cmpi eq, %12, %181 : vector<8x1xi32>
    %183 = vector.shape_cast %182 : vector<8x1xi1> to vector<8x1xi1>
    %184 = vector.broadcast %183 : vector<8x1xi1> to vector<8x32xi1>
    %185 = arith.select %184, %180, %142 : vector<8x32xi1>, vector<8x32xf32>
    %186 = vector.extract_strided_slice %6 {offsets = [32, 0], sizes = [8, 128], strides = [1, 1]} : vector<64x128xf32> to vector<8x128xf32>
    %cst_31 = arith.constant dense<0.000000e+00> : vector<8x128xf32>
    %187 = tpu.matmul %161, %7, %cst_31 {dimension_numbers = #tpu.dot_dimension_numbers<[1], [0], [0], [1], [0, 0, 1, 1], [], []>} : vector<8x32xf32>, vector<32x128xf32>, vector<8x128xf32> -> vector<8x128xf32>
    %188 = arith.addf %186, %187 : vector<8x128xf32>
    %189 = vector.extract_strided_slice %188 {offsets = [0, 0], sizes = [8, 96], strides = [1, 1]} : vector<8x128xf32> to vector<8x96xf32>
    %190 = arith.negf %189 : vector<8x96xf32>
    %191 = math.exp %190 : vector<8x96xf32>
    %cst_32 = arith.constant 1.000000e+00 : f32
    %192 = vector.broadcast %cst_32 : f32 to vector<8x96xf32>
    %193 = arith.addf %192, %191 : vector<8x96xf32>
    %194 = arith.divf %192, %193 : vector<8x96xf32>
    %195 = vector.extract_strided_slice %188 {offsets = [0, 96], sizes = [8, 32], strides = [1, 1]} : vector<8x128xf32> to vector<8x32xf32>
    %196 = math.tanh %195 : vector<8x32xf32>
    %197 = vector.extract_strided_slice %194 {offsets = [0, 0], sizes = [8, 32], strides = [1, 1]} : vector<8x96xf32> to vector<8x32xf32>
    %198 = vector.extract_strided_slice %194 {offsets = [0, 32], sizes = [8, 32], strides = [1, 1]} : vector<8x96xf32> to vector<8x32xf32>
    %199 = vector.extract_strided_slice %194 {offsets = [0, 64], sizes = [8, 32], strides = [1, 1]} : vector<8x96xf32> to vector<8x32xf32>
    %200 = arith.mulf %198, %159 : vector<8x32xf32>
    %201 = arith.mulf %197, %196 : vector<8x32xf32>
    %202 = arith.addf %200, %201 : vector<8x32xf32>
    %203 = math.tanh %202 : vector<8x32xf32>
    %204 = arith.mulf %199, %203 : vector<8x32xf32>
    %205 = tpu.concatenate %204, %180 in 1 : vector<8x32xf32>, vector<8x32xf32> -> vector<8x64xf32>
    %cst_33 = arith.constant dense<0.000000e+00> : vector<8x128xf32>
    %206 = tpu.matmul %205, %8, %cst_33 {dimension_numbers = #tpu.dot_dimension_numbers<[1], [0], [0], [1], [0, 0, 1, 1], [], []>} : vector<8x64xf32>, vector<64x128xf32>, vector<8x128xf32> -> vector<8x128xf32>
    %207 = arith.addf %206, %11 : vector<8x128xf32>
    %208 = vector.extract_strided_slice %207 {offsets = [0, 0], sizes = [8, 96], strides = [1, 1]} : vector<8x128xf32> to vector<8x96xf32>
    %209 = arith.negf %208 : vector<8x96xf32>
    %210 = math.exp %209 : vector<8x96xf32>
    %cst_34 = arith.constant 1.000000e+00 : f32
    %211 = vector.broadcast %cst_34 : f32 to vector<8x96xf32>
    %212 = arith.addf %211, %210 : vector<8x96xf32>
    %213 = arith.divf %211, %212 : vector<8x96xf32>
    %214 = vector.extract_strided_slice %207 {offsets = [0, 96], sizes = [8, 32], strides = [1, 1]} : vector<8x128xf32> to vector<8x32xf32>
    %215 = math.tanh %214 : vector<8x32xf32>
    %216 = vector.extract_strided_slice %213 {offsets = [0, 0], sizes = [8, 32], strides = [1, 1]} : vector<8x96xf32> to vector<8x32xf32>
    %217 = vector.extract_strided_slice %213 {offsets = [0, 32], sizes = [8, 32], strides = [1, 1]} : vector<8x96xf32> to vector<8x32xf32>
    %218 = vector.extract_strided_slice %213 {offsets = [0, 64], sizes = [8, 32], strides = [1, 1]} : vector<8x96xf32> to vector<8x32xf32>
    %219 = arith.mulf %217, %178 : vector<8x32xf32>
    %220 = arith.mulf %216, %215 : vector<8x32xf32>
    %221 = arith.addf %219, %220 : vector<8x32xf32>
    %222 = math.tanh %221 : vector<8x32xf32>
    %223 = arith.mulf %218, %222 : vector<8x32xf32>
    %c4_i32 = arith.constant 4 : i32
    %224 = vector.broadcast %c4_i32 : i32 to vector<8x1xi32>
    %225 = arith.cmpi eq, %12, %224 : vector<8x1xi32>
    %226 = vector.shape_cast %225 : vector<8x1xi1> to vector<8x1xi1>
    %227 = vector.broadcast %226 : vector<8x1xi1> to vector<8x32xi1>
    %228 = arith.select %227, %223, %185 : vector<8x32xi1>, vector<8x32xf32>
    %229 = vector.extract_strided_slice %6 {offsets = [40, 0], sizes = [8, 128], strides = [1, 1]} : vector<64x128xf32> to vector<8x128xf32>
    %cst_35 = arith.constant dense<0.000000e+00> : vector<8x128xf32>
    %230 = tpu.matmul %204, %7, %cst_35 {dimension_numbers = #tpu.dot_dimension_numbers<[1], [0], [0], [1], [0, 0, 1, 1], [], []>} : vector<8x32xf32>, vector<32x128xf32>, vector<8x128xf32> -> vector<8x128xf32>
    %231 = arith.addf %229, %230 : vector<8x128xf32>
    %232 = vector.extract_strided_slice %231 {offsets = [0, 0], sizes = [8, 96], strides = [1, 1]} : vector<8x128xf32> to vector<8x96xf32>
    %233 = arith.negf %232 : vector<8x96xf32>
    %234 = math.exp %233 : vector<8x96xf32>
    %cst_36 = arith.constant 1.000000e+00 : f32
    %235 = vector.broadcast %cst_36 : f32 to vector<8x96xf32>
    %236 = arith.addf %235, %234 : vector<8x96xf32>
    %237 = arith.divf %235, %236 : vector<8x96xf32>
    %238 = vector.extract_strided_slice %231 {offsets = [0, 96], sizes = [8, 32], strides = [1, 1]} : vector<8x128xf32> to vector<8x32xf32>
    %239 = math.tanh %238 : vector<8x32xf32>
    %240 = vector.extract_strided_slice %237 {offsets = [0, 0], sizes = [8, 32], strides = [1, 1]} : vector<8x96xf32> to vector<8x32xf32>
    %241 = vector.extract_strided_slice %237 {offsets = [0, 32], sizes = [8, 32], strides = [1, 1]} : vector<8x96xf32> to vector<8x32xf32>
    %242 = vector.extract_strided_slice %237 {offsets = [0, 64], sizes = [8, 32], strides = [1, 1]} : vector<8x96xf32> to vector<8x32xf32>
    %243 = arith.mulf %241, %202 : vector<8x32xf32>
    %244 = arith.mulf %240, %239 : vector<8x32xf32>
    %245 = arith.addf %243, %244 : vector<8x32xf32>
    %246 = math.tanh %245 : vector<8x32xf32>
    %247 = arith.mulf %242, %246 : vector<8x32xf32>
    %248 = tpu.concatenate %247, %223 in 1 : vector<8x32xf32>, vector<8x32xf32> -> vector<8x64xf32>
    %cst_37 = arith.constant dense<0.000000e+00> : vector<8x128xf32>
    %249 = tpu.matmul %248, %8, %cst_37 {dimension_numbers = #tpu.dot_dimension_numbers<[1], [0], [0], [1], [0, 0, 1, 1], [], []>} : vector<8x64xf32>, vector<64x128xf32>, vector<8x128xf32> -> vector<8x128xf32>
    %250 = arith.addf %249, %11 : vector<8x128xf32>
    %251 = vector.extract_strided_slice %250 {offsets = [0, 0], sizes = [8, 96], strides = [1, 1]} : vector<8x128xf32> to vector<8x96xf32>
    %252 = arith.negf %251 : vector<8x96xf32>
    %253 = math.exp %252 : vector<8x96xf32>
    %cst_38 = arith.constant 1.000000e+00 : f32
    %254 = vector.broadcast %cst_38 : f32 to vector<8x96xf32>
    %255 = arith.addf %254, %253 : vector<8x96xf32>
    %256 = arith.divf %254, %255 : vector<8x96xf32>
    %257 = vector.extract_strided_slice %250 {offsets = [0, 96], sizes = [8, 32], strides = [1, 1]} : vector<8x128xf32> to vector<8x32xf32>
    %258 = math.tanh %257 : vector<8x32xf32>
    %259 = vector.extract_strided_slice %256 {offsets = [0, 0], sizes = [8, 32], strides = [1, 1]} : vector<8x96xf32> to vector<8x32xf32>
    %260 = vector.extract_strided_slice %256 {offsets = [0, 32], sizes = [8, 32], strides = [1, 1]} : vector<8x96xf32> to vector<8x32xf32>
    %261 = vector.extract_strided_slice %256 {offsets = [0, 64], sizes = [8, 32], strides = [1, 1]} : vector<8x96xf32> to vector<8x32xf32>
    %262 = arith.mulf %260, %221 : vector<8x32xf32>
    %263 = arith.mulf %259, %258 : vector<8x32xf32>
    %264 = arith.addf %262, %263 : vector<8x32xf32>
    %265 = math.tanh %264 : vector<8x32xf32>
    %266 = arith.mulf %261, %265 : vector<8x32xf32>
    %c5_i32 = arith.constant 5 : i32
    %267 = vector.broadcast %c5_i32 : i32 to vector<8x1xi32>
    %268 = arith.cmpi eq, %12, %267 : vector<8x1xi32>
    %269 = vector.shape_cast %268 : vector<8x1xi1> to vector<8x1xi1>
    %270 = vector.broadcast %269 : vector<8x1xi1> to vector<8x32xi1>
    %271 = arith.select %270, %266, %228 : vector<8x32xi1>, vector<8x32xf32>
    %272 = vector.extract_strided_slice %6 {offsets = [48, 0], sizes = [8, 128], strides = [1, 1]} : vector<64x128xf32> to vector<8x128xf32>
    %cst_39 = arith.constant dense<0.000000e+00> : vector<8x128xf32>
    %273 = tpu.matmul %247, %7, %cst_39 {dimension_numbers = #tpu.dot_dimension_numbers<[1], [0], [0], [1], [0, 0, 1, 1], [], []>} : vector<8x32xf32>, vector<32x128xf32>, vector<8x128xf32> -> vector<8x128xf32>
    %274 = arith.addf %272, %273 : vector<8x128xf32>
    %275 = vector.extract_strided_slice %274 {offsets = [0, 0], sizes = [8, 96], strides = [1, 1]} : vector<8x128xf32> to vector<8x96xf32>
    %276 = arith.negf %275 : vector<8x96xf32>
    %277 = math.exp %276 : vector<8x96xf32>
    %cst_40 = arith.constant 1.000000e+00 : f32
    %278 = vector.broadcast %cst_40 : f32 to vector<8x96xf32>
    %279 = arith.addf %278, %277 : vector<8x96xf32>
    %280 = arith.divf %278, %279 : vector<8x96xf32>
    %281 = vector.extract_strided_slice %274 {offsets = [0, 96], sizes = [8, 32], strides = [1, 1]} : vector<8x128xf32> to vector<8x32xf32>
    %282 = math.tanh %281 : vector<8x32xf32>
    %283 = vector.extract_strided_slice %280 {offsets = [0, 0], sizes = [8, 32], strides = [1, 1]} : vector<8x96xf32> to vector<8x32xf32>
    %284 = vector.extract_strided_slice %280 {offsets = [0, 32], sizes = [8, 32], strides = [1, 1]} : vector<8x96xf32> to vector<8x32xf32>
    %285 = vector.extract_strided_slice %280 {offsets = [0, 64], sizes = [8, 32], strides = [1, 1]} : vector<8x96xf32> to vector<8x32xf32>
    %286 = arith.mulf %284, %245 : vector<8x32xf32>
    %287 = arith.mulf %283, %282 : vector<8x32xf32>
    %288 = arith.addf %286, %287 : vector<8x32xf32>
    %289 = math.tanh %288 : vector<8x32xf32>
    %290 = arith.mulf %285, %289 : vector<8x32xf32>
    %291 = tpu.concatenate %290, %266 in 1 : vector<8x32xf32>, vector<8x32xf32> -> vector<8x64xf32>
    %cst_41 = arith.constant dense<0.000000e+00> : vector<8x128xf32>
    %292 = tpu.matmul %291, %8, %cst_41 {dimension_numbers = #tpu.dot_dimension_numbers<[1], [0], [0], [1], [0, 0, 1, 1], [], []>} : vector<8x64xf32>, vector<64x128xf32>, vector<8x128xf32> -> vector<8x128xf32>
    %293 = arith.addf %292, %11 : vector<8x128xf32>
    %294 = vector.extract_strided_slice %293 {offsets = [0, 0], sizes = [8, 96], strides = [1, 1]} : vector<8x128xf32> to vector<8x96xf32>
    %295 = arith.negf %294 : vector<8x96xf32>
    %296 = math.exp %295 : vector<8x96xf32>
    %cst_42 = arith.constant 1.000000e+00 : f32
    %297 = vector.broadcast %cst_42 : f32 to vector<8x96xf32>
    %298 = arith.addf %297, %296 : vector<8x96xf32>
    %299 = arith.divf %297, %298 : vector<8x96xf32>
    %300 = vector.extract_strided_slice %293 {offsets = [0, 96], sizes = [8, 32], strides = [1, 1]} : vector<8x128xf32> to vector<8x32xf32>
    %301 = math.tanh %300 : vector<8x32xf32>
    %302 = vector.extract_strided_slice %299 {offsets = [0, 0], sizes = [8, 32], strides = [1, 1]} : vector<8x96xf32> to vector<8x32xf32>
    %303 = vector.extract_strided_slice %299 {offsets = [0, 32], sizes = [8, 32], strides = [1, 1]} : vector<8x96xf32> to vector<8x32xf32>
    %304 = vector.extract_strided_slice %299 {offsets = [0, 64], sizes = [8, 32], strides = [1, 1]} : vector<8x96xf32> to vector<8x32xf32>
    %305 = arith.mulf %303, %264 : vector<8x32xf32>
    %306 = arith.mulf %302, %301 : vector<8x32xf32>
    %307 = arith.addf %305, %306 : vector<8x32xf32>
    %308 = math.tanh %307 : vector<8x32xf32>
    %309 = arith.mulf %304, %308 : vector<8x32xf32>
    %c6_i32 = arith.constant 6 : i32
    %310 = vector.broadcast %c6_i32 : i32 to vector<8x1xi32>
    %311 = arith.cmpi eq, %12, %310 : vector<8x1xi32>
    %312 = vector.shape_cast %311 : vector<8x1xi1> to vector<8x1xi1>
    %313 = vector.broadcast %312 : vector<8x1xi1> to vector<8x32xi1>
    %314 = arith.select %313, %309, %271 : vector<8x32xi1>, vector<8x32xf32>
    %315 = vector.extract_strided_slice %6 {offsets = [56, 0], sizes = [8, 128], strides = [1, 1]} : vector<64x128xf32> to vector<8x128xf32>
    %cst_43 = arith.constant dense<0.000000e+00> : vector<8x128xf32>
    %316 = tpu.matmul %290, %7, %cst_43 {dimension_numbers = #tpu.dot_dimension_numbers<[1], [0], [0], [1], [0, 0, 1, 1], [], []>} : vector<8x32xf32>, vector<32x128xf32>, vector<8x128xf32> -> vector<8x128xf32>
    %317 = arith.addf %315, %316 : vector<8x128xf32>
    %318 = vector.extract_strided_slice %317 {offsets = [0, 0], sizes = [8, 96], strides = [1, 1]} : vector<8x128xf32> to vector<8x96xf32>
    %319 = arith.negf %318 : vector<8x96xf32>
    %320 = math.exp %319 : vector<8x96xf32>
    %cst_44 = arith.constant 1.000000e+00 : f32
    %321 = vector.broadcast %cst_44 : f32 to vector<8x96xf32>
    %322 = arith.addf %321, %320 : vector<8x96xf32>
    %323 = arith.divf %321, %322 : vector<8x96xf32>
    %324 = vector.extract_strided_slice %317 {offsets = [0, 96], sizes = [8, 32], strides = [1, 1]} : vector<8x128xf32> to vector<8x32xf32>
    %325 = math.tanh %324 : vector<8x32xf32>
    %326 = vector.extract_strided_slice %323 {offsets = [0, 0], sizes = [8, 32], strides = [1, 1]} : vector<8x96xf32> to vector<8x32xf32>
    %327 = vector.extract_strided_slice %323 {offsets = [0, 32], sizes = [8, 32], strides = [1, 1]} : vector<8x96xf32> to vector<8x32xf32>
    %328 = vector.extract_strided_slice %323 {offsets = [0, 64], sizes = [8, 32], strides = [1, 1]} : vector<8x96xf32> to vector<8x32xf32>
    %329 = arith.mulf %327, %288 : vector<8x32xf32>
    %330 = arith.mulf %326, %325 : vector<8x32xf32>
    %331 = arith.addf %329, %330 : vector<8x32xf32>
    %332 = math.tanh %331 : vector<8x32xf32>
    %333 = arith.mulf %328, %332 : vector<8x32xf32>
    %334 = tpu.concatenate %333, %309 in 1 : vector<8x32xf32>, vector<8x32xf32> -> vector<8x64xf32>
    %cst_45 = arith.constant dense<0.000000e+00> : vector<8x128xf32>
    %335 = tpu.matmul %334, %8, %cst_45 {dimension_numbers = #tpu.dot_dimension_numbers<[1], [0], [0], [1], [0, 0, 1, 1], [], []>} : vector<8x64xf32>, vector<64x128xf32>, vector<8x128xf32> -> vector<8x128xf32>
    %336 = arith.addf %335, %11 : vector<8x128xf32>
    %337 = vector.extract_strided_slice %336 {offsets = [0, 0], sizes = [8, 96], strides = [1, 1]} : vector<8x128xf32> to vector<8x96xf32>
    %338 = arith.negf %337 : vector<8x96xf32>
    %339 = math.exp %338 : vector<8x96xf32>
    %cst_46 = arith.constant 1.000000e+00 : f32
    %340 = vector.broadcast %cst_46 : f32 to vector<8x96xf32>
    %341 = arith.addf %340, %339 : vector<8x96xf32>
    %342 = arith.divf %340, %341 : vector<8x96xf32>
    %343 = vector.extract_strided_slice %336 {offsets = [0, 96], sizes = [8, 32], strides = [1, 1]} : vector<8x128xf32> to vector<8x32xf32>
    %344 = math.tanh %343 : vector<8x32xf32>
    %345 = vector.extract_strided_slice %342 {offsets = [0, 0], sizes = [8, 32], strides = [1, 1]} : vector<8x96xf32> to vector<8x32xf32>
    %346 = vector.extract_strided_slice %342 {offsets = [0, 32], sizes = [8, 32], strides = [1, 1]} : vector<8x96xf32> to vector<8x32xf32>
    %347 = vector.extract_strided_slice %342 {offsets = [0, 64], sizes = [8, 32], strides = [1, 1]} : vector<8x96xf32> to vector<8x32xf32>
    %348 = arith.mulf %346, %307 : vector<8x32xf32>
    %349 = arith.mulf %345, %344 : vector<8x32xf32>
    %350 = arith.addf %348, %349 : vector<8x32xf32>
    %351 = math.tanh %350 : vector<8x32xf32>
    %352 = arith.mulf %347, %351 : vector<8x32xf32>
    %c7_i32 = arith.constant 7 : i32
    %353 = vector.broadcast %c7_i32 : i32 to vector<8x1xi32>
    %354 = arith.cmpi eq, %12, %353 : vector<8x1xi32>
    %355 = vector.shape_cast %354 : vector<8x1xi1> to vector<8x1xi1>
    %356 = vector.broadcast %355 : vector<8x1xi1> to vector<8x32xi1>
    %357 = arith.select %356, %352, %314 : vector<8x32xi1>, vector<8x32xf32>
    %cst_47 = arith.constant 0.000000e+00 : f32
    %358 = vector.broadcast %cst_47 : f32 to vector<8x32xf32>
    %359 = arith.maximumf %357, %358 : vector<8x32xf32>
    %c0_48 = arith.constant 0 : index
    %c0_49 = arith.constant 0 : index
    %360 = vector.load %arg8[%c0_48, %c0_49] : memref<32x4xf32, #tpu.memory_space<vmem>>, vector<32x4xf32>
    %cst_50 = arith.constant dense<0.000000e+00> : vector<8x4xf32>
    %361 = tpu.matmul %359, %360, %cst_50 {dimension_numbers = #tpu.dot_dimension_numbers<[1], [0], [0], [1], [0, 0, 1, 1], [], []>} : vector<8x32xf32>, vector<32x4xf32>, vector<8x4xf32> -> vector<8x4xf32>
    %c0_51 = arith.constant 0 : index
    %c0_52 = arith.constant 0 : index
    %362 = vector.load %arg9[%c0_51, %c0_52] : memref<1x4xf32, #tpu.memory_space<vmem>>, vector<1x4xf32>
    %363 = vector.broadcast %362 : vector<1x4xf32> to vector<8x4xf32>
    %364 = arith.addf %361, %363 : vector<8x4xf32>
    %c0_53 = arith.constant 0 : index
    %c0_54 = arith.constant 0 : index
    %365 = vector.load %arg10[%c0_53, %c0_54] : memref<8x4xf32, #tpu.memory_space<vmem>>, vector<8x4xf32>
    tpu.vector_store %arg10[%c0_53, %c0_54], %364 {strides = array<i32>} : memref<8x4xf32, #tpu.memory_space<vmem>>, vector<8x4xf32>,
    return
  }
  func.func @transform_0(%arg0: i32) -> (i32, i32, i32) {
    %c0_i32 = arith.constant 0 : i32
    %c0_i32_0 = arith.constant 0 : i32
    %c0_i32_1 = arith.constant 0 : i32
    return %c0_i32, %arg0, %c0_i32_0 : i32, i32, i32
  }
  func.func @transform_1(%arg0: i32) -> (i32, i32) {
    %c0_i32 = arith.constant 0 : i32
    %c0_i32_0 = arith.constant 0 : i32
    return %arg0, %c0_i32 : i32, i32
  }
  func.func @transform_2(%arg0: i32) -> (i32, i32) {
    %c0_i32 = arith.constant 0 : i32
    %c0_i32_0 = arith.constant 0 : i32
    %c0_i32_1 = arith.constant 0 : i32
    return %c0_i32, %c0_i32_0 : i32, i32
  }
  func.func @transform_3(%arg0: i32) -> (i32, i32) {
    %c0_i32 = arith.constant 0 : i32
    %c0_i32_0 = arith.constant 0 : i32
    %c0_i32_1 = arith.constant 0 : i32
    return %c0_i32, %c0_i32_0 : i32, i32
  }
  func.func @transform_4(%arg0: i32) -> (i32, i32) {
    %c0_i32 = arith.constant 0 : i32
    %c0_i32_0 = arith.constant 0 : i32
    %c0_i32_1 = arith.constant 0 : i32
    return %c0_i32, %c0_i32_0 : i32, i32
  }
  func.func @transform_5(%arg0: i32) -> (i32, i32) {
    %c0_i32 = arith.constant 0 : i32
    %c0_i32_0 = arith.constant 0 : i32
    %c0_i32_1 = arith.constant 0 : i32
    return %c0_i32, %c0_i32_0 : i32, i32
  }
  func.func @transform_6(%arg0: i32) -> (i32, i32) {
    %c0_i32 = arith.constant 0 : i32
    %c0_i32_0 = arith.constant 0 : i32
    %c0_i32_1 = arith.constant 0 : i32
    return %c0_i32, %c0_i32_0 : i32, i32
  }
  func.func @transform_7(%arg0: i32) -> (i32, i32) {
    %c0_i32 = arith.constant 0 : i32
    %c0_i32_0 = arith.constant 0 : i32
    %c0_i32_1 = arith.constant 0 : i32
    return %c0_i32, %c0_i32_0 : i32, i32
  }
  func.func @transform_8(%arg0: i32) -> (i32, i32) {
    %c0_i32 = arith.constant 0 : i32
    %c0_i32_0 = arith.constant 0 : i32
    %c0_i32_1 = arith.constant 0 : i32
    return %c0_i32, %c0_i32_0 : i32, i32
  }
  func.func @transform_9(%arg0: i32) -> (i32, i32) {
    %c0_i32 = arith.constant 0 : i32
    %c0_i32_0 = arith.constant 0 : i32
    return %arg0, %c0_i32 : i32, i32
  }
}

</mosaic_0001>

<bundles_post_ra>
// kernel: lstm_forward_pallas.1
= control target key start
LH: loop header
LB: loop body
LE: loop exit
PB: predicated region body
PF: predicated region fallthrough
CT: control target
= control target key end

     0   :  { %vm46_vm0 = vcmask 130048   ;;  %v1437_v7 = vmov 0.0   ;;  %s1438_s23 = smov 32   ;;  %s1439_s17 = smov 64   ;;  %vm129_vm5 = vcmask 261120   ;;  %vm196_vm6 = vcmask 523264   ;;  %s1926_s4 = inlined_call_operand.vmem [shape: f32[32,128], index: 4, kind: input, shape index: {}]   ;;  %s1927_s2 = inlined_call_operand.vmem [shape: f32[16,128], index: 2, kind: input, shape index: {}]   ;;  %s1928_s0 = inlined_call_operand.vmem [shape: f32[8,8,16], index: 0, kind: input, shape index: {}]   ;;  %s1929_s3 = inlined_call_operand.vmem [shape: f32[1,128], index: 3, kind: input, shape index: {}]   ;;  %s1930_s5 = inlined_call_operand.vmem [shape: f32[64,128], index: 5, kind: input, shape index: {}]   ;;  %s1931_s6 = inlined_call_operand.vmem [shape: f32[1,128], index: 6, kind: input, shape index: {}]   ;;  %s1932_s1 = inlined_call_operand.vmem [shape: s32[8,1], index: 1, kind: input, shape index: {}]   ;;  %s1933_s7 = inlined_call_operand.vmem [shape: f32[32,4], index: 7, kind: input, shape index: {}]   ;;  %s1934_s8 = inlined_call_operand.vmem [shape: f32[1,4], index: 8, kind: input, shape index: {}]   ;;  %s1935_s9 = inlined_call_operand.vmem [shape: f32[8,4], index: 9, kind: output, shape index: {}]  }
   0x1   :  { %v1495_v0 = vld [vmem:[%s1926_s4 + $0x18] sm:$0xff]  ;;  %v41_v1 = vld [vmem:[%s1927_s2 + $0x8] sm:$0xff]  ;;  %v1503_v2 = vld [vmem:[%s1926_s4 + $0x10] sm:$0xff] }
   0x2   :  { %145 = vmatpush.msra.mxu1 %v1495_v0  ;;  %85 = vmatpush.msra.mxu0 %v41_v1  ;;  %v40_v3 = vld [vmem:[%s1927_s2] sm:$0xff]  ;;  %v1515_v5 = vld [vmem:[%s1926_s4 + $0x8] sm:$0xff]  ;;  %v1549_v33 = vld [vmem:[%s1930_s5 + $0x38] sm:$0xff]  ;;  %s1440_s2 = smov 96  }
   0x3   :  { %v32_v4 = vld [vmem:[%s1928_s0] sm:$0xff]  ;;  %278 = vmatpush.msra.mxu3 %v1495_v0  ;;  %v1554_v34 = vld [vmem:[%s1930_s5 + $0x30] sm:$0xff]  ;;  %208 = vmatpush.msra.mxu2 %v1549_v33  ;;  %v1561_v35 = vld [vmem:[%s1930_s5 + $0x28] sm:$0xff] }
   0x4   :  { %146 = vmatpush.msra.mxu1 %v1503_v2  ;;  %86 = vmatpush.msra.mxu0 %v40_v3  ;;  %v1523_v6 = vld [vmem:[%s1926_s4] sm:$0xff]  ;;  %v1577_v37 = vld [vmem:[%s1930_s5 + $0x18] sm:$0xff]  ;;  %v1585_v38 = vld [vmem:[%s1930_s5 + $0x10] sm:$0xff] }
   0x5   :  { %1256 = vmatmul.msk.f32.vlgmr.msra.gmra.mxu0 %vm46_vm0, %v32_v4  ;;  %279 = vmatpush.msra.mxu3 %v1503_v2  ;;  %v1537_v8 = vld [vmem:[%s1929_s3] ss:$0 sm:$0xff]  ;;  %v1593_v39 = vld [vmem:[%s1930_s5 + $0x8] sm:$0xff] }
   0x6   :  { %147 = vmatpush.msra.mxu1 %v1515_v5  ;;  %1160 = vmatpush.msrb.mxu0 %v1549_v33  ;;  %v1569_v36 = vld [vmem:[%s1930_s5 + $0x20] sm:$0xff]  ;;  %v33_v43 = vld [vmem:[%s1928_s0 + $0x8] sm:$0xff] }
   0x7   :  { %280 = vmatpush.msra.mxu3 %v1515_v5  ;;  %209 = vmatpush.msra.mxu2 %v1554_v34  ;;  %v1606_v42 = vld [vmem:[%s1930_s5] sm:$0xff] }
   0x8   :  { %148 = vmatpush.msra.mxu1 %v1523_v6  ;;  %1161 = vmatpush.msrb.mxu0 %v1554_v34  ;;  %v1650_v50 = vld [vmem:[%s1931_s6] ss:$0 sm:$0xff] }
   0x9   :  { %149 = vmatmul.f32.vlgmr.msra.gmra.mxu1 %v1437_v7  ;;  %281 = vmatpush.msra.mxu3 %v1523_v6 }
   0xa   :  { %344 = vmatpush.msrb.mxu1 %v1549_v33  ;;  %210 = vmatpush.msra.mxu2 %v1561_v35 }
   0xb   :  { %414 = vmatpush.msrb.mxu3 %v1495_v0  ;;  %1162 = vmatpush.msrb.mxu0 %v1561_v35 }
   0xc   :  { %345 = vmatpush.msrb.mxu1 %v1554_v34  ;;  %211 = vmatpush.msra.mxu2 %v1569_v36 }
   0xd   :  { %415 = vmatpush.msrb.mxu3 %v1503_v2  ;;  %1163 = vmatpush.msrb.mxu0 %v1569_v36 }
   0xe   :  { %346 = vmatpush.msrb.mxu1 %v1561_v35  ;;  %212 = vmatpush.msra.mxu2 %v1577_v37 }
   0xf   :  { %416 = vmatpush.msrb.mxu3 %v1515_v5  ;;  %1164 = vmatpush.msrb.mxu0 %v1577_v37 }
  0x10   :  { %347 = vmatpush.msrb.mxu1 %v1569_v36  ;;  %213 = vmatpush.msra.mxu2 %v1585_v38 }
  0x11   :  { %417 = vmatpush.msrb.mxu3 %v1523_v6  ;;  %1165 = vmatpush.msrb.mxu0 %v1585_v38 }
  0x12   :  { %348 = vmatpush.msrb.mxu1 %v1577_v37  ;;  %214 = vmatpush.msra.mxu2 %v1593_v39 }
  0x13   :  { %1166 = vmatpush.msrb.mxu0 %v1593_v39 }
  0x14   :  { %349 = vmatpush.msrb.mxu1 %v1585_v38  ;;  %215 = vmatpush.msra.mxu2 %v1606_v42 }
  0x15   :  { %1257 = vmatmul.msk.f32.gmra.mxu0 %vm46_vm0, %v33_v43 }
  0x16   :  { %350 = vmatpush.msrb.mxu1 %v1593_v39  ;;  %480 = vmatpush.msrb.mxu2 %v1549_v33 }
  0x17   :  { %1167 = vmatpush.msrb.mxu0 %v1606_v42 }
  0x18   :  { %351 = vmatpush.msrb.mxu1 %v1606_v42  ;;  %481 = vmatpush.msrb.mxu2 %v1554_v34 }
  0x1a   :  { %616 = vmatpush.msra.mxu1 %v1549_v33  ;;  %482 = vmatpush.msrb.mxu2 %v1561_v35 }
  0x1c   :  { %617 = vmatpush.msra.mxu1 %v1554_v34  ;;  %483 = vmatpush.msrb.mxu2 %v1569_v36 }
  0x1e   :  { %618 = vmatpush.msra.mxu1 %v1561_v35  ;;  %484 = vmatpush.msrb.mxu2 %v1577_v37 }
  0x20   :  { %619 = vmatpush.msra.mxu1 %v1569_v36  ;;  %485 = vmatpush.msrb.mxu2 %v1585_v38 }
  0x22   :  { %620 = vmatpush.msra.mxu1 %v1577_v37  ;;  %486 = vmatpush.msrb.mxu2 %v1593_v39 }
  0x24   :  { %621 = vmatpush.msra.mxu1 %v1585_v38  ;;  %487 = vmatpush.msrb.mxu2 %v1606_v42 }
  0x26   :  { %622 = vmatpush.msra.mxu1 %v1593_v39 }
  0x28   :  { %623 = vmatpush.msra.mxu1 %v1606_v42 }
  0x82   :  { %v88_v9 = vpop.f32.mrf.mxu0 }
  0x83   :  { %v89_v10 = vadd.f32 %v1537_v8, %v88_v9 }
  0x86   :  { %v150_v11 = vpop.f32.mrf.mxu1 }
  0x87   :  { %v153_v12 = vadd.f32 %v150_v11, %v89_v10 }
  0x89   :  { %1307 = vtanh.f32 %v153_v12  ;;  %v1264_v14 = vmul.f32 -1.442695, %v153_v12 }
  0x8b   :  { %1309 = vpow2.f32 %v1264_v14 }
  0x8f   :  { %v1308_v13 = vpop.eup %1307 }
  0x90   :  { %176 = vrot.lane.b32.xlu0 %v1308_v13, %s1438_s23 }
  0x91   :  { %v1310_v15 = vpop.eup %1309 }
  0x92   :  { %v157_v16 = vadd.f32 1.0, %v1310_v15  ;;  %v91_v46 = vpop.f32.mrf.mxu0 }
  0x93   :  { %v92_v47 = vadd.f32 %v1537_v8, %v91_v46  ;;  %v34_v46 = vld [vmem:[%s1928_s0 + $0x10] sm:$0xff] }
  0x94   :  { %1311 = vrcp.f32 %v157_v16  ;;  %v169_v22 = vand.u32 2147483648, %v157_v16  ;;  %vm163_vm2 = vweird.f32 %v157_v16  ;;  %v167_v23 = vand.u32 2147483647, %v157_v16  ;;  %1258 = vmatmul.msk.f32.gmra.mxu0 %vm46_vm0, %v34_v46 }
  0x96   :  { %v170_v25 = vor.u32 1.1754944e-38, %v169_v22  ;;  %vm168_vm4 = vcmp.eq.f32.partialorder %v167_v23, 8.507059e+37 }
  0x9a   :  { %v1312_v17 = vpop.eup %1311 }
  0x9b   :  { %v159_v18 = vmul.f32 %v1312_v17, %v157_v16  ;;  %vm164_vm1 = vweird.f32 %v1312_v17 }
  0x9c   :  { %vm165_vm3 = vmor %vm163_vm2, %vm164_vm1 }
  0x9d   :  { %v160_v19 = vsub.f32 1.0, %v159_v18 }
  0x9f   :  { %v161_v20 = vmul.f32 %v1312_v17, %v160_v19 }
  0xa1   :  { %v162_v21 = vadd.f32 %v1312_v17, %v161_v20 }
  0xa3   :  { %v166_v24 = vsel %vm165_vm3, %v1312_v17, %v162_v21 }
  0xa4   :  { %v171_v27 = vsel %vm168_vm4, %v170_v25, %v166_v24 }
  0xa5   :  { %v174_v29 = vmul.f32 0.0, %v171_v27 }
 0x102   :  { %v177_v26 = vpop.permute.xlu0 %176 }
 0x103   :  { %v179_v28 = vmul.f32 %v177_v26, %v171_v27 }
 0x105   :  { %181 = vrot.lane.b32.xlu0 %v179_v28, %s1438_s23 }
 0x177   :  { %v182_v30 = vpop.permute.xlu0 %181 }
 0x178   :  { %v1542_v31 = vadd.f32 %v182_v30, %v174_v29 }
 0x17a   :  { %1313 = vtanh.f32 %v1542_v31 }
 0x180   :  { %v1314_v32 = vpop.eup %1313 }
 0x181   :  { %187 = vrot.lane.b32.xlu1 %v1314_v32, %s1438_s23 }
 0x1f3   :  { %v188_v40 = vpop.permute.xlu1 %187 }
 0x1f4   :  { %v190_v41 = vmul.f32 %v188_v40, %v171_v27 }
 0x1f6   :  { %192 = vrot.lane.b32.xlu1 %v190_v41, %s1439_s17 }
 0x268   :  { %v193_v44 = vpop.permute.xlu1 %192 }
 0x269   :  { %1267 = vmatmul.msk.f32.vlgmr.msra.gmra.mxu3 %vm129_vm5, %v193_v44  ;;  %v195_v45 = vsel %vm129_vm5, %v193_v44, 0.0 }
 0x26a   :  { %1265 = vmatmul.msk.f32.vlgmr.msra.gmra.mxu2 %vm196_vm6, %v195_v45  ;;  %550 = vmatpush.msra.mxu3 %v1495_v0 }
 0x26b   :  { %752 = vmatpush.msra.mxu2 %v1549_v33 }
 0x26c   :  { %551 = vmatpush.msra.mxu3 %v1503_v2 }
 0x26d   :  { %753 = vmatpush.msra.mxu2 %v1554_v34 }
 0x26e   :  { %552 = vmatpush.msra.mxu3 %v1515_v5 }
 0x26f   :  { %754 = vmatpush.msra.mxu2 %v1561_v35 }
 0x270   :  { %553 = vmatpush.msra.mxu3 %v1523_v6 }
 0x271   :  { %755 = vmatpush.msra.mxu2 %v1569_v36 }
 0x273   :  { %756 = vmatpush.msra.mxu2 %v1577_v37 }
 0x275   :  { %757 = vmatpush.msra.mxu2 %v1585_v38 }
 0x277   :  { %758 = vmatpush.msra.mxu2 %v1593_v39 }
 0x279   :  { %759 = vmatpush.msra.mxu2 %v1606_v42 }
 0x2ec   :  { %v283_v48 = vpop.f32.mrf.mxu3 }
 0x2ed   :  { %v286_v49 = vadd.f32 %v283_v48, %v92_v47  ;;  %v217_v51 = vpop.f32.mrf.mxu2 }
 0x2ee   :  { %v218_v52 = vadd.f32 %v1650_v50, %v217_v51  ;;  %v94_v51 = vpop.f32.mrf.mxu0 }
 0x2ef   :  { %1315 = vtanh.f32 %v286_v49  ;;  %v1268_v55 = vmul.f32 -1.442695, %v286_v49 }
 0x2f0   :  { %1317 = vtanh.f32 %v218_v52  ;;  %v1266_v56 = vmul.f32 -1.442695, %v218_v52  ;;  %v95_v52 = vadd.f32 %v1537_v8, %v94_v51 }
 0x2f1   :  { %1319 = vpow2.f32 %v1268_v55 }
 0x2f2   :  { %1321 = vpow2.f32 %v1266_v56 }
 0x2f5   :  { %v1316_v53 = vpop.eup %1315 }
 0x2f6   :  { %309 = vrot.lane.b32.xlu2 %v1316_v53, %s1438_s23  ;;  %v1318_v54 = vpop.eup %1317 }
 0x2f7   :  { %v1320_v57 = vpop.eup %1319 }
 0x2f8   :  { %v290_v58 = vadd.f32 1.0, %v1320_v57  ;;  %v1322_v59 = vpop.eup %1321 }
 0x2f9   :  { %v223_v60 = vadd.f32 1.0, %v1322_v59 }
 0x2fa   :  { %1323 = vrcp.f32 %v290_v58  ;;  %v302_v10 = vand.u32 2147483648, %v290_v58  ;;  %vm296_vm8 = vweird.f32 %v290_v58  ;;  %v300_v11 = vand.u32 2147483647, %v290_v58 }
 0x2fb   :  { %1325 = vrcp.f32 %v223_v60  ;;  %v235_v19 = vand.u32 2147483648, %v223_v60  ;;  %vm229_vm12 = vweird.f32 %v223_v60  ;;  %v233_v20 = vand.u32 2147483647, %v223_v60 }
 0x2fc   :  { %v303_v14 = vor.u32 1.1754944e-38, %v302_v10  ;;  %vm301_vm10 = vcmp.eq.f32.partialorder %v300_v11, 8.507059e+37 }
 0x2fd   :  { %v236_v22 = vor.u32 1.1754944e-38, %v235_v19  ;;  %vm234_vm14 = vcmp.eq.f32.partialorder %v233_v20, 8.507059e+37 }
 0x2fe   :  { %242 = vrot.lane.b32.xlu2 %v1318_v54, %s1438_s23 }
 0x300   :  { %v1324_v61 = vpop.eup %1323 }
 0x301   :  { %v292_v62 = vmul.f32 %v1324_v61, %v290_v58  ;;  %v1326_v1 = vpop.eup %1325  ;;  %vm297_vm7 = vweird.f32 %v1324_v61 }
 0x302   :  { %v225_v4 = vmul.f32 %v1326_v1, %v223_v60  ;;  %vm298_vm9 = vmor %vm296_vm8, %vm297_vm7  ;;  %vm230_vm11 = vweird.f32 %v1326_v1 }
 0x303   :  { %v293_v63 = vsub.f32 1.0, %v292_v62  ;;  %vm231_vm13 = vmor %vm229_vm12, %vm230_vm11 }
 0x304   :  { %v226_v9 = vsub.f32 1.0, %v225_v4 }
 0x305   :  { %v294_v3 = vmul.f32 %v1324_v61, %v293_v63 }
 0x306   :  { %v227_v13 = vmul.f32 %v1326_v1, %v226_v9 }
 0x307   :  { %v295_v7 = vadd.f32 %v1324_v61, %v294_v3 }
 0x308   :  { %v228_v18 = vadd.f32 %v1326_v1, %v227_v13 }
 0x309   :  { %v299_v12 = vsel %vm298_vm9, %v1324_v61, %v295_v7 }
 0x30a   :  { %v304_v16 = vsel %vm301_vm10, %v303_v14, %v299_v12  ;;  %v232_v21 = vsel %vm231_vm13, %v1326_v1, %v228_v18 }
 0x30b   :  { %v237_v24 = vsel %vm234_vm14, %v236_v22, %v232_v21  ;;  %v307_v26 = vmul.f32 %v304_v16, %v1542_v31 }
 0x30c   :  { %v240_v29 = vmul.f32 0.0, %v237_v24 }
 0x350   :  { %v310_v15 = vpop.permute.xlu2 %309 }
 0x351   :  { %v312_v17 = vmul.f32 %v310_v15, %v304_v16 }
 0x353   :  { %314 = vrot.lane.b32.xlu0 %v312_v17, %s1438_s23 }
 0x358   :  { %v243_v23 = vpop.permute.xlu2 %242 }
 0x359   :  { %v245_v25 = vmul.f32 %v243_v23, %v237_v24 }
 0x35b   :  { %247 = vrot.lane.b32.xlu1 %v245_v25, %s1438_s23 }
 0x3c5   :  { %v315_v27 = vpop.permute.xlu0 %314 }
 0x3c6   :  { %v1658_v28 = vadd.f32 %v315_v27, %v307_v26 }
 0x3c8   :  { %1327 = vtanh.f32 %v1658_v28 }
 0x3cd   :  { %v248_v30 = vpop.permute.xlu1 %247 }
 0x3ce   :  { %v1328_v32 = vpop.eup %1327  ;;  %v1661_v40 = vadd.f32 %v248_v30, %v240_v29 }
 0x3cf   :  { %320 = vrot.lane.b32.xlu2 %v1328_v32, %s1438_s23 }
 0x3d0   :  { %1329 = vtanh.f32 %v1661_v40 }
 0x3d6   :  { %v1330_v41 = vpop.eup %1329 }
 0x3d7   :  { %253 = vrot.lane.b32.xlu0 %v1330_v41, %s1438_s23 }
 0x429   :  { %v321_v43 = vpop.permute.xlu2 %320 }
 0x42a   :  { %v323_v44 = vmul.f32 %v321_v43, %v304_v16 }
 0x42c   :  { %325 = vrot.lane.b32.xlu1 %v323_v44, %s1439_s17 }
 0x449   :  { %v254_v31 = vpop.permute.xlu0 %253 }
 0x44a   :  { %v1667_v45 = vmul.f32 %v254_v31, %v237_v24 }
 0x44c   :  { %329 = vrot.lane.b32.xlu2 %v1667_v45, %s1440_s2 }
 0x49e   :  { %v326_v47 = vpop.permute.xlu1 %325 }
 0x49f   :  { %1271 = vmatmul.msk.f32.vlgmr.msrb.gmra.mxu3 %vm129_vm5, %v326_v47 }
 0x4a0   :  { %686 = vmatpush.msrb.mxu3 %v1495_v0 }
 0x4a2   :  { %687 = vmatpush.msrb.mxu3 %v1503_v2 }
 0x4a4   :  { %688 = vmatpush.msrb.mxu3 %v1515_v5 }
 0x4a6   :  { %v330_v48 = vpop.permute.xlu2 %329  ;;  %689 = vmatpush.msrb.mxu3 %v1523_v6 }
 0x4a7   :  { %v332_v49 = vsel %vm129_vm5, %v326_v47, %v330_v48 }
 0x4a8   :  { %1269 = vmatmul.msk.f32.vlgmr.msrb.gmra.mxu1 %vm196_vm6, %v332_v49 }
 0x4a9   :  { %888 = vmatpush.msrb.mxu1 %v1549_v33 }
 0x4ab   :  { %889 = vmatpush.msrb.mxu1 %v1554_v34 }
 0x4ad   :  { %890 = vmatpush.msrb.mxu1 %v1561_v35 }
 0x4af   :  { %891 = vmatpush.msrb.mxu1 %v1569_v36 }
 0x4b1   :  { %892 = vmatpush.msrb.mxu1 %v1577_v37 }
 0x4b3   :  { %893 = vmatpush.msrb.mxu1 %v1585_v38 }
 0x4b5   :  { %894 = vmatpush.msrb.mxu1 %v1593_v39 }
 0x4b7   :  { %895 = vmatpush.msrb.mxu1 %v1606_v42 }
 0x522   :  { %v419_v53 = vpop.f32.mrf.mxu3 }
 0x523   :  { %v422_v54 = vadd.f32 %v419_v53, %v95_v52 }
 0x525   :  { %1331 = vtanh.f32 %v422_v54  ;;  %v353_v55 = vpop.f32.mrf.mxu1  ;;  %v1272_v59 = vmul.f32 -1.442695, %v422_v54 }
 0x526   :  { %v354_v56 = vadd.f32 %v1650_v50, %v353_v55 }
 0x528   :  { %1333 = vtanh.f32 %v354_v56  ;;  %v1270_v60 = vmul.f32 -1.442695, %v354_v56 }
 0x529   :  { %1335 = vpow2.f32 %v1272_v59 }
 0x52a   :  { %1337 = vpow2.f32 %v1270_v60 }
 0x52b   :  { %v1332_v57 = vpop.eup %1331 }
 0x52c   :  { %445 = vrot.lane.b32.xlu0 %v1332_v57, %s1438_s23 }
 0x52e   :  { %v1334_v58 = vpop.eup %1333 }
 0x52f   :  { %378 = vrot.lane.b32.xlu1 %v1334_v58, %s1438_s23  ;;  %v1336_v61 = vpop.eup %1335 }
 0x530   :  { %v1338_v62 = vpop.eup %1337  ;;  %v426_v63 = vadd.f32 1.0, %v1336_v61 }
 0x531   :  { %v359_v1 = vadd.f32 1.0, %v1338_v62 }
 0x532   :  { %1339 = vrcp.f32 %v426_v63  ;;  %v438_v15 = vand.u32 2147483648, %v426_v63  ;;  %vm432_vm1 = vweird.f32 %v426_v63  ;;  %v436_v16 = vand.u32 2147483647, %v426_v63 }
 0x533   :  { %1341 = vrcp.f32 %v359_v1  ;;  %v371_v19 = vand.u32 2147483648, %v359_v1  ;;  %vm365_vm4 = vweird.f32 %v359_v1  ;;  %v369_v21 = vand.u32 2147483647, %v359_v1 }
 0x534   :  { %v439_v20 = vor.u32 1.1754944e-38, %v438_v15  ;;  %vm437_vm7 = vcmp.eq.f32.partialorder %v436_v16, 8.507059e+37 }
 0x535   :  { %v372_v26 = vor.u32 1.1754944e-38, %v371_v19  ;;  %vm370_vm9 = vcmp.eq.f32.partialorder %v369_v21, 8.507059e+37 }
 0x538   :  { %v1340_v3 = vpop.eup %1339 }
 0x539   :  { %v1342_v4 = vpop.eup %1341  ;;  %v428_v7 = vmul.f32 %v1340_v3, %v426_v63  ;;  %vm433_vm15 = vweird.f32 %v1340_v3 }
 0x53a   :  { %v361_v9 = vmul.f32 %v1342_v4, %v359_v1  ;;  %vm434_vm2 = vmor %vm432_vm1, %vm433_vm15  ;;  %vm366_vm3 = vweird.f32 %v1342_v4 }
 0x53b   :  { %v429_v10 = vsub.f32 1.0, %v428_v7  ;;  %vm367_vm8 = vmor %vm365_vm4, %vm366_vm3 }
 0x53c   :  { %v362_v11 = vsub.f32 1.0, %v361_v9 }
 0x53d   :  { %v430_v12 = vmul.f32 %v1340_v3, %v429_v10 }
 0x53e   :  { %v363_v13 = vmul.f32 %v1342_v4, %v362_v11 }
 0x53f   :  { %v431_v14 = vadd.f32 %v1340_v3, %v430_v12 }
 0x540   :  { %v364_v17 = vadd.f32 %v1342_v4, %v363_v13 }
 0x541   :  { %v435_v18 = vsel %vm434_vm2, %v1340_v3, %v431_v14 }
 0x542   :  { %v440_v22 = vsel %vm437_vm7, %v439_v20, %v435_v18  ;;  %v368_v24 = vsel %vm367_vm8, %v1342_v4, %v364_v17 }
 0x543   :  { %v373_v29 = vsel %vm370_vm9, %v372_v26, %v368_v24  ;;  %v443_v32 = vmul.f32 %v440_v22, %v1658_v28 }
 0x544   :  { %v376_v31 = vmul.f32 %v373_v29, %v1661_v40  ;;  %v35_v40 = vld [vmem:[%s1928_s0 + $0x18] sm:$0xff] }
 0x545   :  { %1259 = vmatmul.msk.f32.gmra.mxu0 %vm46_vm0, %v35_v40 }
 0x59e   :  { %v446_v23 = vpop.permute.xlu0 %445 }
 0x59f   :  { %v448_v25 = vmul.f32 %v446_v23, %v440_v22 }
 0x5a1   :  { %v379_v27 = vpop.permute.xlu1 %378  ;;  %450 = vrot.lane.b32.xlu2 %v448_v25, %s1438_s23 }
 0x5a2   :  { %v381_v30 = vmul.f32 %v379_v27, %v373_v29 }
 0x5a4   :  { %383 = vrot.lane.b32.xlu0 %v381_v30, %s1438_s23 }
 0x5c2   :  { %v97_v56 = vpop.f32.mrf.mxu0 }
 0x5c3   :  { %v98_v57 = vadd.f32 %v1537_v8, %v97_v56 }
 0x5fb   :  { %v451_v41 = vpop.permute.xlu2 %450 }
 0x5fc   :  { %v1697_v43 = vadd.f32 %v451_v41, %v443_v32 }
 0x5fe   :  { %1343 = vtanh.f32 %v1697_v43 }
 0x604   :  { %v1344_v44 = vpop.eup %1343 }
 0x605   :  { %456 = vrot.lane.b32.xlu1 %v1344_v44, %s1438_s23 }
 0x616   :  { %v384_v46 = vpop.permute.xlu0 %383 }
 0x617   :  { %v1702_v47 = vadd.f32 %v384_v46, %v376_v31 }
 0x619   :  { %1345 = vtanh.f32 %v1702_v47 }
 0x61f   :  { %v1346_v48 = vpop.eup %1345 }
 0x620   :  { %389 = vrot.lane.b32.xlu2 %v1346_v48, %s1438_s23 }
 0x677   :  { %v457_v49 = vpop.permute.xlu1 %456 }
 0x678   :  { %v459_v28 = vmul.f32 %v457_v49, %v440_v22 }
 0x67a   :  { %461 = vrot.lane.b32.xlu0 %v459_v28, %s1439_s17  ;;  %v390_v51 = vpop.permute.xlu2 %389 }
 0x67b   :  { %v1707_v52 = vmul.f32 %v390_v51, %v373_v29 }
 0x67d   :  { %465 = vrot.lane.b32.xlu1 %v1707_v52, %s1440_s2 }
 0x6ec   :  { %v462_v53 = vpop.permute.xlu0 %461 }
 0x6ed   :  { %1275 = vmatmul.msk.f32.vlgmr.msra.gmra.mxu3 %vm129_vm5, %v462_v53 }
 0x6ee   :  { %822 = vmatpush.msra.mxu3 %v1495_v0 }
 0x6ef   :  { %v466_v54 = vpop.permute.xlu1 %465 }
 0x6f0   :  { %v468_v55 = vsel %vm129_vm5, %v462_v53, %v466_v54  ;;  %823 = vmatpush.msra.mxu3 %v1503_v2 }
 0x6f1   :  { %1273 = vmatmul.msk.f32.vlgmr.msrb.gmra.mxu2 %vm196_vm6, %v468_v55 }
 0x6f2   :  { %824 = vmatpush.msra.mxu3 %v1515_v5  ;;  %1024 = vmatpush.msrb.mxu2 %v1549_v33 }
 0x6f4   :  { %825 = vmatpush.msra.mxu3 %v1523_v6  ;;  %1025 = vmatpush.msrb.mxu2 %v1554_v34 }
 0x6f6   :  { %1026 = vmatpush.msrb.mxu2 %v1561_v35 }
 0x6f8   :  { %1027 = vmatpush.msrb.mxu2 %v1569_v36 }
 0x6fa   :  { %1028 = vmatpush.msrb.mxu2 %v1577_v37 }
 0x6fc   :  { %1029 = vmatpush.msrb.mxu2 %v1585_v38 }
 0x6fe   :  { %1030 = vmatpush.msrb.mxu2 %v1593_v39 }
 0x700   :  { %1031 = vmatpush.msrb.mxu2 %v1606_v42 }
 0x770   :  { %v555_v33 = vpop.f32.mrf.mxu3 }
 0x771   :  { %v558_v58 = vadd.f32 %v555_v33, %v98_v57 }
 0x773   :  { %1347 = vtanh.f32 %v558_v58  ;;  %v1276_v37 = vmul.f32 -1.442695, %v558_v58 }
 0x774   :  { %v489_v59 = vpop.f32.mrf.mxu2 }
 0x775   :  { %v490_v34 = vadd.f32 %v1650_v50, %v489_v59 }
 0x777   :  { %1349 = vtanh.f32 %v490_v34  ;;  %v1274_v61 = vmul.f32 -1.442695, %v490_v34 }
 0x778   :  { %1351 = vpow2.f32 %v1276_v37 }
 0x779   :  { %v1348_v35 = vpop.eup %1347 }
 0x77a   :  { %581 = vrot.lane.b32.xlu2 %v1348_v35, %s1438_s23 }
 0x77d   :  { %v1350_v36 = vpop.eup %1349 }
 0x77e   :  { %514 = vrot.lane.b32.xlu0 %v1350_v36, %s1438_s23  ;;  %v1352_v38 = vpop.eup %1351 }
 0x77f   :  { %v562_v39 = vadd.f32 1.0, %v1352_v38 }
 0x781   :  { %1353 = vrcp.f32 %v562_v39  ;;  %v574_v4 = vand.u32 2147483648, %v562_v39  ;;  %vm568_vm11 = vweird.f32 %v562_v39  ;;  %v572_v7 = vand.u32 2147483647, %v562_v39 }
 0x782   :  { %1355 = vpow2.f32 %v1274_v61 }
 0x783   :  { %v575_v11 = vor.u32 1.1754944e-38, %v574_v4  ;;  %vm573_vm13 = vcmp.eq.f32.partialorder %v572_v7, 8.507059e+37 }
 0x787   :  { %v1354_v42 = vpop.eup %1353 }
 0x788   :  { %v564_v60 = vmul.f32 %v1354_v42, %v562_v39  ;;  %v1356_v1 = vpop.eup %1355  ;;  %vm569_vm10 = vweird.f32 %v1354_v42 }
 0x789   :  { %v495_v9 = vadd.f32 1.0, %v1356_v1  ;;  %vm570_vm12 = vmor %vm568_vm11, %vm569_vm10 }
 0x78a   :  { %v565_v62 = vsub.f32 1.0, %v564_v60 }
 0x78b   :  { %1357 = vrcp.f32 %v495_v9  ;;  %v507_v20 = vand.u32 2147483648, %v495_v9  ;;  %vm501_vm15 = vweird.f32 %v495_v9  ;;  %v505_v21 = vand.u32 2147483647, %v495_v9 }
 0x78c   :  { %v566_v63 = vmul.f32 %v1354_v42, %v565_v62 }
 0x78d   :  { %v508_v23 = vor.u32 1.1754944e-38, %v507_v20  ;;  %vm506_vm2 = vcmp.eq.f32.partialorder %v505_v21, 8.507059e+37 }
 0x78e   :  { %v567_v3 = vadd.f32 %v1354_v42, %v566_v63 }
 0x790   :  { %v571_v10 = vsel %vm570_vm12, %v1354_v42, %v567_v3 }
 0x791   :  { %v576_v13 = vsel %vm573_vm13, %v575_v11, %v571_v10  ;;  %v1358_v15 = vpop.eup %1357 }
 0x792   :  { %v497_v16 = vmul.f32 %v1358_v15, %v495_v9  ;;  %vm502_vm14 = vweird.f32 %v1358_v15  ;;  %v579_v27 = vmul.f32 %v576_v13, %v1697_v43 }
 0x793   :  { %vm503_vm1 = vmor %vm501_vm15, %vm502_vm14 }
 0x794   :  { %v498_v17 = vsub.f32 1.0, %v497_v16 }
 0x796   :  { %v499_v18 = vmul.f32 %v1358_v15, %v498_v17 }
 0x798   :  { %v500_v19 = vadd.f32 %v1358_v15, %v499_v18 }
 0x79a   :  { %v504_v22 = vsel %vm503_vm1, %v1358_v15, %v500_v19 }
 0x79b   :  { %v509_v25 = vsel %vm506_vm2, %v508_v23, %v504_v22 }
 0x79c   :  { %v512_v32 = vmul.f32 %v509_v25, %v1702_v47  ;;  %v36_v47 = vld [vmem:[%s1928_s0 + $0x20] sm:$0xff] }
 0x79d   :  { %1260 = vmatmul.msk.f32.gmra.mxu0 %vm46_vm0, %v36_v47 }
 0x7d4   :  { %v582_v12 = vpop.permute.xlu2 %581 }
 0x7d5   :  { %v584_v14 = vmul.f32 %v582_v12, %v576_v13 }
 0x7d7   :  { %586 = vrot.lane.b32.xlu1 %v584_v14, %s1438_s23 }
 0x7f0   :  { %v515_v24 = vpop.permute.xlu0 %514 }
 0x7f1   :  { %v517_v26 = vmul.f32 %v515_v24, %v509_v25 }
 0x7f3   :  { %519 = vrot.lane.b32.xlu2 %v517_v26, %s1438_s23 }
 0x81a   :  { %v100_v54 = vpop.f32.mrf.mxu0 }
 0x81b   :  { %v101_v55 = vadd.f32 %v1537_v8, %v100_v54 }
 0x849   :  { %v587_v29 = vpop.permute.xlu1 %586 }
 0x84a   :  { %v1737_v30 = vadd.f32 %v587_v29, %v579_v27 }
 0x84c   :  { %1359 = vtanh.f32 %v1737_v30 }
 0x84d   :  { %v520_v41 = vpop.permute.xlu2 %519 }
 0x84e   :  { %v1741_v44 = vadd.f32 %v520_v41, %v512_v32 }
 0x850   :  { %1361 = vtanh.f32 %v1741_v44 }
 0x852   :  { %v1360_v31 = vpop.eup %1359 }
 0x853   :  { %592 = vrot.lane.b32.xlu0 %v1360_v31, %s1438_s23 }
 0x856   :  { %v1362_v46 = vpop.eup %1361 }
 0x857   :  { %525 = vrot.lane.b32.xlu1 %v1362_v46, %s1438_s23 }
 0x8c5   :  { %v593_v48 = vpop.permute.xlu0 %592 }
 0x8c6   :  { %v595_v43 = vmul.f32 %v593_v48, %v576_v13 }
 0x8c8   :  { %597 = vrot.lane.b32.xlu2 %v595_v43, %s1439_s17 }
 0x8c9   :  { %v526_v49 = vpop.permute.xlu1 %525 }
 0x8ca   :  { %v1747_v28 = vmul.f32 %v526_v49, %v509_v25  ;;  %v37_v49 = vld [vmem:[%s1928_s0 + $0x28] sm:$0xff] }
 0x8cb   :  { %1261 = vmatmul.msk.f32.gmra.mxu0 %vm46_vm0, %v37_v49 }
 0x8cc   :  { %601 = vrot.lane.b32.xlu0 %v1747_v28, %s1440_s2 }
 0x922   :  { %v598_v51 = vpop.permute.xlu2 %597 }
 0x923   :  { %1279 = vmatmul.msk.f32.vlgmr.msrb.gmra.mxu3 %vm129_vm5, %v598_v51 }
 0x924   :  { %958 = vmatpush.msrb.mxu3 %v1495_v0 }
 0x926   :  { %959 = vmatpush.msrb.mxu3 %v1503_v2 }
 0x928   :  { %960 = vmatpush.msrb.mxu3 %v1515_v5 }
 0x92a   :  { %961 = vmatpush.msrb.mxu3 %v1523_v6 }
 0x93e   :  { %v602_v40 = vpop.permute.xlu0 %601 }
 0x93f   :  { %v604_v53 = vsel %vm129_vm5, %v598_v51, %v602_v40 }
 0x940   :  { %1277 = vmatmul.msk.f32.vlgmr.msra.gmra.mxu1 %vm196_vm6, %v604_v53 }
 0x948   :  { %v103_v53 = vpop.f32.mrf.mxu0 }
 0x949   :  { %v104_v54 = vadd.f32 %v1537_v8, %v103_v53 }
 0x9a6   :  { %v691_v56 = vpop.f32.mrf.mxu3 }
 0x9a7   :  { %v694_v57 = vadd.f32 %v691_v56, %v101_v55 }
 0x9a9   :  { %1363 = vtanh.f32 %v694_v57  ;;  %v1280_v36 = vmul.f32 -1.442695, %v694_v57 }
 0x9af   :  { %v1364_v33 = vpop.eup %1363 }
 0x9b0   :  { %717 = vrot.lane.b32.xlu1 %v1364_v33, %s1438_s23 }
 0x9bd   :  { %v625_v58 = vpop.f32.mrf.mxu1 }
 0x9be   :  { %v626_v59 = vadd.f32 %v1650_v50, %v625_v58 }
 0x9c0   :  { %1365 = vtanh.f32 %v626_v59  ;;  %v1278_v35 = vmul.f32 -1.442695, %v626_v59 }
 0x9c2   :  { %1367 = vpow2.f32 %v1278_v35 }
 0x9c3   :  { %1369 = vpow2.f32 %v1280_v36 }
 0x9c6   :  { %v1366_v34 = vpop.eup %1365 }
 0x9c7   :  { %650 = vrot.lane.b32.xlu2 %v1366_v34, %s1438_s23 }
 0x9c8   :  { %v1368_v37 = vpop.eup %1367 }
 0x9c9   :  { %v1370_v38 = vpop.eup %1369  ;;  %v631_v39 = vadd.f32 1.0, %v1368_v37 }
 0x9ca   :  { %v698_v42 = vadd.f32 1.0, %v1370_v38 }
 0x9cb   :  { %1371 = vrcp.f32 %v631_v39  ;;  %v643_v10 = vand.u32 2147483648, %v631_v39  ;;  %vm637_vm7 = vweird.f32 %v631_v39  ;;  %v641_v12 = vand.u32 2147483647, %v631_v39 }
 0x9cc   :  { %1373 = vrcp.f32 %v698_v42  ;;  %v710_v13 = vand.u32 2147483648, %v698_v42  ;;  %vm704_vm9 = vweird.f32 %v698_v42  ;;  %v708_v14 = vand.u32 2147483647, %v698_v42 }
 0x9cd   :  { %v644_v16 = vor.u32 1.1754944e-38, %v643_v10  ;;  %vm642_vm11 = vcmp.eq.f32.partialorder %v641_v12, 8.507059e+37 }
 0x9ce   :  { %v711_v18 = vor.u32 1.1754944e-38, %v710_v13  ;;  %vm709_vm12 = vcmp.eq.f32.partialorder %v708_v14, 8.507059e+37 }
 0x9d1   :  { %v1372_v60 = vpop.eup %1371 }
 0x9d2   :  { %v1374_v61 = vpop.eup %1373  ;;  %v633_v62 = vmul.f32 %v1372_v60, %v631_v39  ;;  %vm638_vm3 = vweird.f32 %v1372_v60 }
 0x9d3   :  { %v700_v63 = vmul.f32 %v1374_v61, %v698_v42  ;;  %vm705_vm4 = vweird.f32 %v1374_v61  ;;  %vm639_vm8 = vmor %vm637_vm7, %vm638_vm3 }
 0x9d4   :  { %v634_v1 = vsub.f32 1.0, %v633_v62  ;;  %vm706_vm10 = vmor %vm704_vm9, %vm705_vm4 }
 0x9d5   :  { %v701_v3 = vsub.f32 1.0, %v700_v63 }
 0x9d6   :  { %v635_v4 = vmul.f32 %v1372_v60, %v634_v1 }
 0x9d7   :  { %v702_v7 = vmul.f32 %v1374_v61, %v701_v3 }
 0x9d8   :  { %v636_v9 = vadd.f32 %v1372_v60, %v635_v4 }
 0x9d9   :  { %v703_v11 = vadd.f32 %v1374_v61, %v702_v7 }
 0x9da   :  { %v640_v15 = vsel %vm639_vm8, %v1372_v60, %v636_v9 }
 0x9db   :  { %v707_v17 = vsel %vm706_vm10, %v1374_v61, %v703_v11  ;;  %v645_v20 = vsel %vm642_vm11, %v644_v16, %v640_v15 }
 0x9dc   :  { %v712_v22 = vsel %vm709_vm12, %v711_v18, %v707_v17  ;;  %v648_v25 = vmul.f32 %v645_v20, %v1741_v44 }
 0x9dd   :  { %v715_v27 = vmul.f32 %v712_v22, %v1737_v30 }
 0xa21   :  { %v651_v19 = vpop.permute.xlu2 %650 }
 0xa22   :  { %v653_v21 = vmul.f32 %v651_v19, %v645_v20  ;;  %v718_v23 = vpop.permute.xlu1 %717 }
 0xa23   :  { %v720_v24 = vmul.f32 %v718_v23, %v712_v22 }
 0xa24   :  { %655 = vrot.lane.b32.xlu1 %v653_v21, %s1438_s23 }
 0xa25   :  { %722 = vrot.lane.b32.xlu0 %v720_v24, %s1438_s23 }
 0xa96   :  { %v656_v26 = vpop.permute.xlu1 %655 }
 0xa97   :  { %v1770_v29 = vadd.f32 %v656_v26, %v648_v25  ;;  %v723_v32 = vpop.permute.xlu0 %722 }
 0xa98   :  { %v1772_v41 = vadd.f32 %v723_v32, %v715_v27 }
 0xa99   :  { %1375 = vtanh.f32 %v1770_v29 }
 0xa9a   :  { %1377 = vtanh.f32 %v1772_v41 }
 0xa9f   :  { %v1376_v31 = vpop.eup %1375 }
 0xaa0   :  { %v1378_v46 = vpop.eup %1377  ;;  %661 = vrot.lane.b32.xlu0 %v1376_v31, %s1438_s23 }
 0xaa1   :  { %728 = vrot.lane.b32.xlu2 %v1378_v46, %s1438_s23 }
 0xafb   :  { %v729_v48 = vpop.permute.xlu2 %728 }
 0xafc   :  { %v731_v44 = vmul.f32 %v729_v48, %v712_v22 }
 0xafe   :  { %733 = vrot.lane.b32.xlu1 %v731_v44, %s1439_s17 }
 0xb12   :  { %v662_v30 = vpop.permute.xlu0 %661 }
 0xb13   :  { %v1779_v43 = vmul.f32 %v662_v30, %v645_v20 }
 0xb15   :  { %737 = vrot.lane.b32.xlu2 %v1779_v43, %s1440_s2 }
 0xb6f   :  { %v738_v47 = vpop.permute.xlu2 %737 }
 0xb70   :  { %v734_v51 = vpop.permute.xlu1 %733 }
 0xb71   :  { %v740_v40 = vsel %vm129_vm5, %v734_v51, %v738_v47  ;;  %1283 = vmatmul.msk.f32.vlgmr.msra.gmra.mxu3 %vm129_vm5, %v734_v51  ;;  %v1826_v51 = vld [vmem:[%s1929_s3] ss:$0 sm:$0xff] }
 0xb72   :  { %1281 = vmatmul.msk.f32.vlgmr.msra.gmra.mxu2 %vm196_vm6, %v740_v40  ;;  %1094 = vmatpush.msra.mxu3 %v1495_v0 }
 0xb74   :  { %1095 = vmatpush.msra.mxu3 %v1503_v2 }
 0xb76   :  { %1096 = vmatpush.msra.mxu3 %v1515_v5 }
 0xb78   :  { %1097 = vmatpush.msra.mxu3 %v1523_v6 }
 0xbf4   :  { %v827_v55 = vpop.f32.mrf.mxu3 }
 0xbf5   :  { %v830_v56 = vadd.f32 %v827_v55, %v104_v54  ;;  %v761_v57 = vpop.f32.mrf.mxu2 }
 0xbf6   :  { %v762_v33 = vadd.f32 %v1650_v50, %v761_v57 }
 0xbf7   :  { %1379 = vtanh.f32 %v830_v56  ;;  %v1284_v0 = vmul.f32 -1.442695, %v830_v56 }
 0xbf8   :  { %1381 = vtanh.f32 %v762_v33  ;;  %v1282_v2 = vmul.f32 -1.442695, %v762_v33 }
 0xbf9   :  { %1383 = vpow2.f32 %v1284_v0 }
 0xbfa   :  { %1385 = vpow2.f32 %v1282_v2 }
 0xbfd   :  { %v1380_v58 = vpop.eup %1379 }
 0xbfe   :  { %v1382_v59 = vpop.eup %1381  ;;  %853 = vrot.lane.b32.xlu0 %v1380_v58, %s1438_s23 }
 0xbff   :  { %786 = vrot.lane.b32.xlu1 %v1382_v59, %s1438_s23  ;;  %v1384_v5 = vpop.eup %1383 }
 0xc00   :  { %v1386_v6 = vpop.eup %1385  ;;  %v834_v8 = vadd.f32 1.0, %v1384_v5 }
 0xc01   :  { %v767_v34 = vadd.f32 1.0, %v1386_v6 }
 0xc02   :  { %1387 = vrcp.f32 %v834_v8  ;;  %v846_v63 = vand.u32 2147483648, %v834_v8  ;;  %vm840_vm15 = vweird.f32 %v834_v8  ;;  %v844_v3 = vand.u32 2147483647, %v834_v8 }
 0xc03   :  { %1389 = vrcp.f32 %v767_v34  ;;  %v779_v4 = vand.u32 2147483648, %v767_v34  ;;  %vm773_vm2 = vweird.f32 %v767_v34  ;;  %v777_v7 = vand.u32 2147483647, %v767_v34 }
 0xc04   :  { %v847_v10 = vor.u32 1.1754944e-38, %v846_v63  ;;  %vm845_vm4 = vcmp.eq.f32.partialorder %v844_v3, 8.507059e+37 }
 0xc05   :  { %v780_v12 = vor.u32 1.1754944e-38, %v779_v4  ;;  %vm778_vm7 = vcmp.eq.f32.partialorder %v777_v7, 8.507059e+37 }
 0xc08   :  { %v1388_v35 = vpop.eup %1387 }
 0xc09   :  { %v1390_v36 = vpop.eup %1389  ;;  %v836_v37 = vmul.f32 %v1388_v35, %v834_v8  ;;  %vm841_vm13 = vweird.f32 %v1388_v35 }
 0xc0a   :  { %v769_v38 = vmul.f32 %v1390_v36, %v767_v34  ;;  %vm774_vm14 = vweird.f32 %v1390_v36  ;;  %vm842_vm1 = vmor %vm840_vm15, %vm841_vm13 }
 0xc0b   :  { %v837_v39 = vsub.f32 1.0, %v836_v37  ;;  %vm775_vm3 = vmor %vm773_vm2, %vm774_vm14 }
 0xc0c   :  { %v770_v42 = vsub.f32 1.0, %v769_v38 }
 0xc0d   :  { %v838_v60 = vmul.f32 %v1388_v35, %v837_v39 }
 0xc0e   :  { %v771_v61 = vmul.f32 %v1390_v36, %v770_v42 }
 0xc0f   :  { %v839_v62 = vadd.f32 %v1388_v35, %v838_v60 }
 0xc10   :  { %v772_v1 = vadd.f32 %v1390_v36, %v771_v61 }
 0xc11   :  { %v843_v9 = vsel %vm842_vm1, %v1388_v35, %v839_v62 }
 0xc12   :  { %v776_v11 = vsel %vm775_vm3, %v1390_v36, %v772_v1  ;;  %v848_v14 = vsel %vm845_vm4, %v847_v10, %v843_v9 }
 0xc13   :  { %v781_v17 = vsel %vm778_vm7, %v780_v12, %v776_v11  ;;  %v851_v19 = vmul.f32 %v848_v14, %v1772_v41 }
 0xc14   :  { %v784_v23 = vmul.f32 %v781_v17, %v1770_v29  ;;  %v38_v29 = vld [vmem:[%s1928_s0 + $0x30] sm:$0xff] }
 0xc15   :  { %1262 = vmatmul.msk.f32.gmra.mxu0 %vm46_vm0, %v38_v29 }
 0xc70   :  { %v854_v13 = vpop.permute.xlu0 %853 }
 0xc71   :  { %v856_v15 = vmul.f32 %v854_v13, %v848_v14  ;;  %v787_v16 = vpop.permute.xlu1 %786 }
 0xc72   :  { %v789_v18 = vmul.f32 %v787_v16, %v781_v17 }
 0xc73   :  { %858 = vrot.lane.b32.xlu2 %v856_v15, %s1438_s23 }
 0xc74   :  { %791 = vrot.lane.b32.xlu0 %v789_v18, %s1438_s23 }
 0xc92   :  { %v106_v30 = vpop.f32.mrf.mxu0 }
 0xc93   :  { %v107_v40 = vadd.f32 %v1826_v51, %v106_v30 }
 0xccd   :  { %v859_v20 = vpop.permute.xlu2 %858 }
 0xcce   :  { %v1801_v21 = vadd.f32 %v859_v20, %v851_v19 }
 0xcd0   :  { %1391 = vtanh.f32 %v1801_v21 }
 0xcd6   :  { %v1392_v22 = vpop.eup %1391 }
 0xcd7   :  { %864 = vrot.lane.b32.xlu1 %v1392_v22, %s1438_s23 }
 0xce6   :  { %v792_v24 = vpop.permute.xlu0 %791 }
 0xce7   :  { %v1806_v25 = vadd.f32 %v792_v24, %v784_v23 }
 0xce9   :  { %1393 = vtanh.f32 %v1806_v25 }
 0xcef   :  { %v1394_v26 = vpop.eup %1393 }
 0xcf0   :  { %797 = vrot.lane.b32.xlu2 %v1394_v26, %s1438_s23 }
 0xd49   :  { %v865_v27 = vpop.permute.xlu1 %864 }
 0xd4a   :  { %v867_v32 = vmul.f32 %v865_v27, %v848_v14  ;;  %v798_v41 = vpop.permute.xlu2 %797 }
 0xd4b   :  { %v1810_v31 = vmul.f32 %v798_v41, %v781_v17 }
 0xd4c   :  { %869 = vrot.lane.b32.xlu0 %v867_v32, %s1439_s17 }
 0xd4d   :  { %873 = vrot.lane.b32.xlu1 %v1810_v31, %s1440_s2 }
 0xdbe   :  { %v870_v46 = vpop.permute.xlu0 %869 }
 0xdbf   :  { %1287 = vmatmul.msk.f32.vlgmr.msrb.gmra.mxu3 %vm129_vm5, %v870_v46  ;;  %v874_v48 = vpop.permute.xlu1 %873 }
 0xdc0   :  { %v876_v44 = vsel %vm129_vm5, %v870_v46, %v874_v48 }
 0xdc1   :  { %1285 = vmatmul.msk.f32.vlgmr.msrb.gmra.mxu1 %vm196_vm6, %v876_v44 }
 0xe3e   :  { %v897_v49 = vpop.f32.mrf.mxu1 }
 0xe3f   :  { %v898_v47 = vadd.f32 %v1650_v50, %v897_v49 }
 0xe41   :  { %1395 = vtanh.f32 %v898_v47  ;;  %v1286_v57 = vmul.f32 -1.442695, %v898_v47  ;;  %v1860_v47 = vld [vmem:[%s1931_s6] ss:$0 sm:$0xff] }
 0xe42   :  { %v963_v53 = vpop.f32.mrf.mxu3 }
 0xe43   :  { %v966_v54 = vadd.f32 %v963_v53, %v107_v40 }
 0xe45   :  { %1397 = vtanh.f32 %v966_v54  ;;  %v1288_v0 = vmul.f32 -1.442695, %v966_v54 }
 0xe46   :  { %1399 = vpow2.f32 %v1286_v57 }
 0xe47   :  { %v1396_v55 = vpop.eup %1395 }
 0xe48   :  { %922 = vrot.lane.b32.xlu2 %v1396_v55, %s1438_s23 }
 0xe4b   :  { %v1398_v56 = vpop.eup %1397 }
 0xe4c   :  { %989 = vrot.lane.b32.xlu0 %v1398_v56, %s1438_s23  ;;  %v1400_v50 = vpop.eup %1399 }
 0xe4d   :  { %v903_v33 = vadd.f32 1.0, %v1400_v50 }
 0xe4f   :  { %1401 = vrcp.f32 %v903_v33  ;;  %v915_v34 = vand.u32 2147483648, %v903_v33  ;;  %vm909_vm9 = vweird.f32 %v903_v33  ;;  %v913_v35 = vand.u32 2147483647, %v903_v33 }
 0xe50   :  { %1403 = vpow2.f32 %v1288_v0 }
 0xe51   :  { %v916_v38 = vor.u32 1.1754944e-38, %v915_v34  ;;  %vm914_vm11 = vcmp.eq.f32.partialorder %v913_v35, 8.507059e+37 }
 0xe55   :  { %v1402_v58 = vpop.eup %1401 }
 0xe56   :  { %v905_v59 = vmul.f32 %v1402_v58, %v903_v33  ;;  %v1404_v6 = vpop.eup %1403  ;;  %vm910_vm8 = vweird.f32 %v1402_v58 }
 0xe57   :  { %v970_v36 = vadd.f32 1.0, %v1404_v6  ;;  %vm911_vm10 = vmor %vm909_vm9, %vm910_vm8 }
 0xe58   :  { %v906_v2 = vsub.f32 1.0, %v905_v59 }
 0xe59   :  { %1405 = vrcp.f32 %v970_v36  ;;  %v982_v4 = vand.u32 2147483648, %v970_v36  ;;  %vm976_vm13 = vweird.f32 %v970_v36  ;;  %v980_v7 = vand.u32 2147483647, %v970_v36 }
 0xe5a   :  { %v907_v5 = vmul.f32 %v1402_v58, %v906_v2 }
 0xe5b   :  { %v983_v10 = vor.u32 1.1754944e-38, %v982_v4  ;;  %vm981_vm15 = vcmp.eq.f32.partialorder %v980_v7, 8.507059e+37 }
 0xe5c   :  { %v908_v8 = vadd.f32 %v1402_v58, %v907_v5 }
 0xe5e   :  { %v912_v37 = vsel %vm911_vm10, %v1402_v58, %v908_v8 }
 0xe5f   :  { %v917_v42 = vsel %vm914_vm11, %v916_v38, %v912_v37  ;;  %v1406_v61 = vpop.eup %1405 }
 0xe60   :  { %v972_v62 = vmul.f32 %v1406_v61, %v970_v36  ;;  %vm977_vm12 = vweird.f32 %v1406_v61  ;;  %v920_v14 = vmul.f32 %v917_v42, %v1806_v25 }
 0xe61   :  { %vm978_vm14 = vmor %vm976_vm13, %vm977_vm12 }
 0xe62   :  { %v973_v63 = vsub.f32 1.0, %v972_v62 }
 0xe64   :  { %v974_v1 = vmul.f32 %v1406_v61, %v973_v63 }
 0xe66   :  { %v975_v3 = vadd.f32 %v1406_v61, %v974_v1 }
 0xe68   :  { %v979_v9 = vsel %vm978_vm14, %v1406_v61, %v975_v3 }
 0xe69   :  { %v984_v12 = vsel %vm981_vm15, %v983_v10, %v979_v9 }
 0xe6a   :  { %v987_v17 = vmul.f32 %v984_v12, %v1801_v21  ;;  %v39_v21 = vld [vmem:[%s1928_s0 + $0x38] sm:$0xff] }
 0xe6b   :  { %1263 = vmatmul.msk.f32.gmra.mxu0 %vm46_vm0, %v39_v21 }
 0xea2   :  { %v923_v39 = vpop.permute.xlu2 %922 }
 0xea3   :  { %v925_v60 = vmul.f32 %v923_v39, %v917_v42 }
 0xea5   :  { %927 = vrot.lane.b32.xlu1 %v925_v60, %s1438_s23 }
 0xebe   :  { %v990_v11 = vpop.permute.xlu0 %989 }
 0xebf   :  { %v992_v13 = vmul.f32 %v990_v11, %v984_v12 }
 0xec1   :  { %994 = vrot.lane.b32.xlu2 %v992_v13, %s1438_s23 }
 0xee8   :  { %v109_v29 = vpop.f32.mrf.mxu0 }
 0xee9   :  { %v110_v46 = vadd.f32 %v1826_v51, %v109_v29 }
 0xf17   :  { %v928_v15 = vpop.permute.xlu1 %927 }
 0xf18   :  { %v1834_v16 = vadd.f32 %v928_v15, %v920_v14 }
 0xf1a   :  { %1407 = vtanh.f32 %v1834_v16 }
 0xf1b   :  { %v995_v18 = vpop.permute.xlu2 %994 }
 0xf1c   :  { %v1838_v19 = vadd.f32 %v995_v18, %v987_v17 }
 0xf1e   :  { %1409 = vtanh.f32 %v1838_v19 }
 0xf20   :  { %v1408_v20 = vpop.eup %1407 }
 0xf21   :  { %933 = vrot.lane.b32.xlu0 %v1408_v20, %s1438_s23  ;;  %v1441_v20 = vmov 0  }
 0xf22   :  { %1301 = vset.pattern.permute.xlu2 %v1441_v20  ;;  %1302 = vset.pattern.permute.xlu0 %v1441_v20 }
 0xf23   :  { %1303 = vset.pattern.permute.xlu1 %v1441_v20 }
 0xf24   :  { %v1410_v22 = vpop.eup %1409 }
 0xf25   :  { %1000 = vrot.lane.b32.xlu1 %v1410_v22, %s1438_s23 }
 0xf93   :  { %v934_v23 = vpop.permute.xlu0 %933 }
 0xf94   :  { %v1843_v24 = vmul.f32 %v934_v23, %v917_v42 }
 0xf96   :  { %1009 = vrot.lane.b32.xlu0 %v1843_v24, %s1440_s2 }
 0xf97   :  { %v1001_v25 = vpop.permute.xlu1 %1000 }
 0xf98   :  { %v1003_v26 = vmul.f32 %v1001_v25, %v984_v12  ;;  %v128_v25 = vld [vmem:[%s1932_s1] sm:$0xff] }
 0xf99   :  { %vm257_vm10 = vcmp.eq.s32.totalorder %v128_v25, 0  ;;  %vm393_vm11 = vcmp.eq.s32.totalorder %v128_v25, 1  ;;  %vm665_vm12 = vcmp.eq.s32.totalorder %v128_v25, 3  ;;  %vm937_vm13 = vcmp.eq.s32.totalorder %v128_v25, 5 }
 0xf9a   :  { %1005 = vrot.lane.b32.xlu2 %v1003_v26, %s1439_s17  ;;  %v258_v26 = vsel %vm257_vm10, 1, %v1441_v20 }
 0xff4   :  { %v1006_v27 = vpop.permute.xlu2 %1005 }
 0xff5   :  { %1291 = vmatmul.msk.f32.vlgmr.msra.gmra.mxu3 %vm129_vm5, %v1006_v27 }
0x1008   :  { %v1010_v32 = vpop.permute.xlu0 %1009 }
0x1009   :  { %v1012_v41 = vsel %vm129_vm5, %v1006_v27, %v1010_v32 }
0x100a   :  { %1289 = vmatmul.msk.f32.vlgmr.msrb.gmra.mxu2 %vm196_vm6, %v1012_v41 }
0x1078   :  { %v1099_v48 = vpop.f32.mrf.mxu3 }
0x1079   :  { %v1102_v44 = vadd.f32 %v1099_v48, %v110_v46  ;;  %v394_v48 = vsel %vm393_vm11, 1, %v1441_v20 }
0x107b   :  { %1411 = vtanh.f32 %v1102_v44  ;;  %v1292_v54 = vmul.f32 -1.442695, %v1102_v44 }
0x1081   :  { %v1412_v30 = vpop.eup %1411 }
0x1082   :  { %1125 = vrot.lane.b32.xlu2 %v1412_v30, %s1438_s23 }
0x108d   :  { %v1033_v49 = vpop.f32.mrf.mxu2 }
0x108e   :  { %v1034_v40 = vadd.f32 %v1860_v47, %v1033_v49 }
0x1090   :  { %1413 = vtanh.f32 %v1034_v40  ;;  %v1290_v6 = vmul.f32 -1.442695, %v1034_v40 }
0x1091   :  { %1415 = vpow2.f32 %v1292_v54 }
0x1096   :  { %v1414_v53 = vpop.eup %1413 }
0x1097   :  { %1058 = vrot.lane.b32.xlu1 %v1414_v53, %s1438_s23  ;;  %v1416_v51 = vpop.eup %1415 }
0x1098   :  { %v1106_v55 = vadd.f32 1.0, %v1416_v51  ;;  %v666_v51 = vsel %vm665_vm12, 1, %v1441_v20 }
0x109a   :  { %1417 = vrcp.f32 %v1106_v55  ;;  %v1118_v59 = vand.u32 2147483648, %v1106_v55  ;;  %vm1112_vm1 = vweird.f32 %v1106_v55  ;;  %v1116_v0 = vand.u32 2147483647, %v1106_v55 }
0x109b   :  { %1419 = vpow2.f32 %v1290_v6 }
0x109c   :  { %v1119_v5 = vor.u32 1.1754944e-38, %v1118_v59  ;;  %vm1117_vm3 = vcmp.eq.f32.partialorder %v1116_v0, 8.507059e+37 }
0x10a0   :  { %v1418_v56 = vpop.eup %1417 }
0x10a1   :  { %v1108_v57 = vmul.f32 %v1418_v56, %v1106_v55  ;;  %vm1113_vm0 = vweird.f32 %v1418_v56  ;;  %v1420_v36 = vpop.eup %1419 }
0x10a2   :  { %vm1114_vm2 = vmor %vm1112_vm1, %vm1113_vm0  ;;  %v1039_v37 = vadd.f32 1.0, %v1420_v36 }
0x10a3   :  { %v1109_v50 = vsub.f32 1.0, %v1108_v57 }
0x10a4   :  { %1421 = vrcp.f32 %v1039_v37  ;;  %v1051_v62 = vand.u32 2147483648, %v1039_v37  ;;  %vm1045_vm7 = vweird.f32 %v1039_v37  ;;  %v1049_v63 = vand.u32 2147483647, %v1039_v37 }
0x10a5   :  { %v1110_v33 = vmul.f32 %v1418_v56, %v1109_v50  ;;  %v938_v50 = vsel %vm937_vm13, 1, %v1441_v20 }
0x10a6   :  { %v1052_v3 = vor.u32 1.1754944e-38, %v1051_v62  ;;  %vm1050_vm9 = vcmp.eq.f32.partialorder %v1049_v63, 8.507059e+37  ;;  %v1217_v62 = vld [vmem:[%s1933_s7] sm:$0xff] }
0x10a7   :  { %v1111_v58 = vadd.f32 %v1418_v56, %v1110_v33 }
0x10a9   :  { %v1115_v2 = vsel %vm1114_vm2, %v1418_v56, %v1111_v58  ;;  %vm529_vm2 = vcmp.eq.s32.totalorder %v128_v25, 2 }
0x10aa   :  { %v1120_v34 = vsel %vm1117_vm3, %v1119_v5, %v1115_v2  ;;  %v1422_v38 = vpop.eup %1421  ;;  %v530_v6 = vsel %vm529_vm2, 1, %v1441_v20  ;;  %vm801_vm3 = vcmp.eq.s32.totalorder %v128_v25, 4 }
0x10ab   :  { %v1041_v39 = vmul.f32 %v1422_v38, %v1039_v37  ;;  %vm1046_vm4 = vweird.f32 %v1422_v38  ;;  %v1123_v10 = vmul.f32 %v1120_v34, %v1838_v19 }
0x10ac   :  { %vm1047_vm8 = vmor %vm1045_vm7, %vm1046_vm4  ;;  %vm1209_vm4 = vcmp.eq.s32.totalorder %v128_v25, 7 }
0x10ad   :  { %v1042_v42 = vsub.f32 1.0, %v1041_v39 }
0x10af   :  { %v1043_v60 = vmul.f32 %v1422_v38, %v1042_v42  ;;  %v1220_v42 = vld [vmem:[%s1933_s7 + $0x18] sm:$0xff] }
0x10b0   :  { %1242 = vmatpush.msra.mxu1 %v1220_v42 }
0x10b1   :  { %v1044_v61 = vadd.f32 %v1422_v38, %v1043_v60  ;;  %v1219_v60 = vld [vmem:[%s1933_s7 + $0x10] sm:$0xff] }
0x10b2   :  { %1243 = vmatpush.msra.mxu1 %v1219_v60 }
0x10b3   :  { %v1048_v1 = vsel %vm1047_vm8, %v1422_v38, %v1044_v61  ;;  %v1218_v61 = vld [vmem:[%s1933_s7 + $0x8] sm:$0xff] }
0x10b4   :  { %v1053_v7 = vsel %vm1050_vm9, %v1052_v3, %v1048_v1  ;;  %1244 = vmatpush.msra.mxu1 %v1218_v61 }
0x10b5   :  { %v1056_v14 = vmul.f32 %v1053_v7, %v1834_v16 }
0x10b6   :  { %1245 = vmatpush.msra.mxu1 %v1217_v62 }
0x10dc   :  { %v1126_v8 = vpop.permute.xlu2 %1125 }
0x10dd   :  { %v1128_v35 = vmul.f32 %v1126_v8, %v1120_v34  ;;  %v802_v8 = vsel %vm801_vm3, 1, %v1441_v20 }
0x10df   :  { %1130 = vrot.lane.b32.xlu1 %v1128_v35, %s1438_s23 }
0x1109   :  { %v1059_v4 = vpop.permute.xlu1 %1058 }
0x110a   :  { %v1061_v9 = vmul.f32 %v1059_v4, %v1053_v7 }
0x110c   :  { %1063 = vrot.lane.b32.xlu0 %v1061_v9, %s1438_s23 }
0x1151   :  { %v1131_v11 = vpop.permute.xlu1 %1130 }
0x1152   :  { %v1133_v12 = vadd.f32 %v1131_v11, %v1123_v10 }
0x1154   :  { %1423 = vtanh.f32 %v1133_v12 }
0x115a   :  { %v1424_v13 = vpop.eup %1423 }
0x115b   :  { %1136 = vrot.lane.b32.xlu0 %v1424_v13, %s1438_s23 }
0x117e   :  { %v1064_v15 = vpop.permute.xlu0 %1063 }
0x117f   :  { %v1869_v17 = vadd.f32 %v1064_v15, %v1056_v14 }
0x1181   :  { %1425 = vtanh.f32 %v1869_v17 }
0x1187   :  { %v1426_v18 = vpop.eup %1425 }
0x1188   :  { %1069 = vrot.lane.b32.xlu2 %v1426_v18, %s1438_s23 }
0x11cd   :  { %v1137_v19 = vpop.permute.xlu0 %1136 }
0x11ce   :  { %v1139_v22 = vmul.f32 %v1137_v19, %v1120_v34  ;;  %v1210_v34 = vsel %vm1209_vm4, 1, %v1441_v20 }
0x11d0   :  { %1141 = vrot.lane.b32.xlu1 %v1139_v22, %s1439_s17 }
0x11e2   :  { %v1070_v16 = vpop.permute.xlu2 %1069 }
0x11e3   :  { %v1877_v23 = vmul.f32 %v1070_v16, %v1053_v7 }
0x11e5   :  { %1145 = vrot.lane.b32.xlu2 %v1877_v23, %s1440_s2 }
0x11ed   :  { %260 = vperm.xlu2 %1301, %v258_v26  }
0x11f5   :  { %668 = vperm.xlu2 %1301, %v666_v51  }
0x11fd   :  { %940 = vperm.xlu2 %1301, %v938_v50  }
0x1205   :  { %1212 = vperm.xlu2 %1301, %v1210_v34  }
0x123f   :  { %v1146_v21 = vpop.permute.xlu2 %1145 }
0x1242   :  { %v1142_v27 = vpop.permute.xlu1 %1141 }
0x1243   :  { %v1148_v32 = vsel %vm129_vm5, %v1142_v27, %v1146_v21 }
0x1244   :  { %1293 = vmatmul.msk.f32.vlgmr.msrb.gmra.mxu0 %vm196_vm6, %v1148_v32  ;;  %vm1073_vm6 = vcmp.eq.s32.totalorder %v128_v25, 6 }
0x1247   :  { %v261_v39 = vpop.permute.xlu2 %260 }
0x1248   :  { %vm262_vm7 = vcmp.eq.s32.totalorder %v261_v39, 1 }
0x1249   :  { %v263_v4 = vsel %vm262_vm7, %v1667_v45, 0.0 }
0x124f   :  { %v669_v1 = vpop.permute.xlu2 %668 }
0x1250   :  { %vm670_vm10 = vcmp.eq.s32.totalorder %v669_v1, 1 }
0x1257   :  { %v941_v10 = vpop.permute.xlu2 %940 }
0x12c1   :  { %v1169_v41 = vpop.f32.mrf.mxu0 }
0x12c2   :  { %v1170_v29 = vadd.f32 %v1860_v47, %v1169_v41  ;;  %v1074_v47 = vsel %vm1073_vm6, 1, %v1441_v20  ;;  %vm942_vm6 = vcmp.eq.s32.totalorder %v941_v10, 1 }
0x12c4   :  { %1427 = vtanh.f32 %v1170_v29  ;;  %v1294_v44 = vmul.f32 -1.442695, %v1170_v29 }
0x12c6   :  { %1429 = vpow2.f32 %v1294_v44 }
0x12ca   :  { %v1428_v46 = vpop.eup %1427 }
0x12cb   :  { %1194 = vrot.lane.b32.xlu0 %v1428_v46, %s1438_s23 }
0x12cc   :  { %v1430_v30 = vpop.eup %1429 }
0x12cd   :  { %v1175_v49 = vadd.f32 1.0, %v1430_v30 }
0x12cf   :  { %1431 = vrcp.f32 %v1175_v49  ;;  %v1187_v57 = vand.u32 2147483648, %v1175_v49  ;;  %vm1181_vm15 = vweird.f32 %v1175_v49  ;;  %v1185_v33 = vand.u32 2147483647, %v1175_v49 }
0x12d1   :  { %v1188_v59 = vor.u32 1.1754944e-38, %v1187_v57  ;;  %vm1186_vm1 = vcmp.eq.f32.partialorder %v1185_v33, 8.507059e+37 }
0x12d3   :  { %396 = vperm.xlu0 %1302, %v394_v48  }
0x12d5   :  { %v1432_v40 = vpop.eup %1431 }
0x12d6   :  { %v1177_v53 = vmul.f32 %v1432_v40, %v1175_v49  ;;  %vm1182_vm14 = vweird.f32 %v1432_v40 }
0x12d7   :  { %vm1183_vm0 = vmor %vm1181_vm15, %vm1182_vm14  ;;  %vm1250_vm14 = vcmask 31744  }
0x12d8   :  { %v1178_v54 = vsub.f32 1.0, %v1177_v53 }
0x12da   :  { %v1179_v55 = vmul.f32 %v1432_v40, %v1178_v54 }
0x12db   :  { %1076 = vperm.xlu0 %1302, %v1074_v47  }
0x12dc   :  { %v1180_v56 = vadd.f32 %v1432_v40, %v1179_v55 }
0x12de   :  { %v1184_v58 = vsel %vm1183_vm0, %v1432_v40, %v1180_v56 }
0x12df   :  { %v1189_v2 = vsel %vm1186_vm1, %v1188_v59, %v1184_v58 }
0x12e0   :  { %v1192_v35 = vmul.f32 %v1189_v2, %v1869_v17  ;;  %v1213_v17 = vpop.permute.xlu2 %1212 }
0x12e1   :  { %vm1214_vm13 = vcmp.eq.s32.totalorder %v1213_v17, 1 }
0x133d   :  { %v1195_v0 = vpop.permute.xlu0 %1194 }
0x133e   :  { %v1197_v5 = vmul.f32 %v1195_v0, %v1189_v2 }
0x1340   :  { %1199 = vrot.lane.b32.xlu1 %v1197_v5, %s1438_s23 }
0x1345   :  { %v397_v3 = vpop.permute.xlu0 %396 }
0x1346   :  { %vm398_vm8 = vcmp.eq.s32.totalorder %v397_v3, 1 }
0x1347   :  { %v399_v9 = vsel %vm398_vm8, %v1707_v52, %v263_v4 }
0x1348   :  { %532 = vperm.xlu1 %1303, %v530_v6  }
0x134d   :  { %v1077_v14 = vpop.permute.xlu0 %1076 }
0x134e   :  { %vm1078_vm12 = vcmp.eq.s32.totalorder %v1077_v14, 1 }
0x1350   :  { %804 = vperm.xlu1 %1303, %v802_v8  }
0x13b2   :  { %v1200_v36 = vpop.permute.xlu1 %1199 }
0x13b3   :  { %v1202_v37 = vadd.f32 %v1200_v36, %v1192_v35 }
0x13b5   :  { %1433 = vtanh.f32 %v1202_v37 }
0x13ba   :  { %v533_v63 = vpop.permute.xlu1 %532 }
0x13bb   :  { %v1434_v38 = vpop.eup %1433  ;;  %vm534_vm9 = vcmp.eq.s32.totalorder %v533_v63, 1 }
0x13bc   :  { %1205 = vrot.lane.b32.xlu1 %v1434_v38, %s1438_s23  ;;  %v535_v11 = vsel %vm534_vm9, %v1747_v28, %v399_v9 }
0x13bd   :  { %v671_v12 = vsel %vm670_vm10, %v1779_v43, %v535_v11  ;;  %v1306_v43 = vld [vmem:[%s1934_s8] ss:$0 sm:$0xff] }
0x13c2   :  { %v805_v7 = vpop.permute.xlu1 %804 }
0x13c3   :  { %vm806_vm11 = vcmp.eq.s32.totalorder %v805_v7, 1 }
0x13c4   :  { %v807_v13 = vsel %vm806_vm11, %v1810_v31, %v671_v12 }
0x13c5   :  { %v943_v15 = vsel %vm942_vm6, %v1843_v24, %v807_v13 }
0x13c6   :  { %v1079_v20 = vsel %vm1078_vm12, %v1877_v23, %v943_v15 }
0x142e   :  { %v1206_v18 = vpop.permute.xlu1 %1205 }
0x142f   :  { %v1208_v45 = vmul.f32 %v1206_v18, %v1189_v2 }
0x1431   :  { %v1215_v52 = vsel %vm1214_vm13, %v1208_v45, %v1079_v20 }
0x1432   :  { %v1216_v19 = vmax.f32 %v1215_v52, 0.0 }
0x1434   :  { %1226 = vrot.lane.b32.xlu0 %v1216_v19, %s1439_s17 }
0x14a6   :  { %v1227_v28 = vpop.permute.xlu0 %1226 }
0x14a7   :  { %1295 = vmatmul.msk.f32.vlgmr.msra.gmra.mxu1 %vm129_vm5, %v1227_v28 }
0x1524   :  { %v1247_v31 = vpop.f32.mrf.mxu1 }
0x1525   :  { %v1248_v24 = vadd.f32 %v1306_v43, %v1247_v31 }
0x1527   :  { %1251 = vst.msk [vmem:[%s1935_s9] sm:$0xff] %vm1250_vm14, %v1248_v24 }

</bundles_post_ra>
